<compile_context>
chip_gen: v5e
topology: v5e:2x2
jax: 0.10.0
libtpu: 0.0.40
codegen_flags: <defaults>
</compile_context>

<pallas_src>
import functools

import numpy as np
import jax
import jax.numpy as jnp
from jax.experimental import pallas as pl
from jax.experimental.pallas import tpu as pltpu


def _trnorm_kernel(sel_ref, x_ref, out_ref, *, n_loops, n_c, f_u, threshold,
                   trnorm_on_abs, approx_reciprocal):
    """One row tile of the full slab x2[B*X, F].

    sel_ref : (F, 128) f32 constant trace selector (c-major columns, zero padded).
    x_ref / out_ref : (TILE_ROWS, F).
    """
    x = x_ref[...]
    L = n_loops

    # traces[:, c*L + v] = sum_i w[v, i, i, c]   (columns >= n_c*L are exactly zero)
    tr = jnp.dot(x.astype(jnp.float32), sel_ref[...],
                 precision=jax.lax.Precision.HIGHEST,
                 preferred_element_type=jnp.float32)          # (T, 128) on the MXU

    if trnorm_on_abs:
        # per-loop complex norm, then mean over loops
        sq = tr * tr
        s = sq[:, 0:L]
        for c in range(1, n_c):
            s = s + sq[:, c * L:(c + 1) * L]
        a = jnp.sqrt(s)                                        # (T, L)
        norm = jnp.sum(a, axis=-1, keepdims=True) * (1.0 / L)  # (T, 1)
    else:
        # mean over loops first, then complex norm
        sq = None
        for c in range(n_c):
            m = jnp.sum(tr[:, c * L:(c + 1) * L], axis=-1, keepdims=True) * (1.0 / L)
            sq = m * m if sq is None else sq + m * m
        norm = jnp.sqrt(sq)                                    # (T, 1)

    norm = jnp.maximum(norm, jnp.float32(threshold))           # clamp(min=threshold)
    inv = pl.reciprocal(norm, approx=approx_reciprocal)        # (T, 1)

    # scale = 1/norm on Wilson-loop columns, 1.0 on link (u) columns -> one dense store.
    lane = jax.lax.broadcasted_iota(jnp.int32, (1, x.shape[1]), 1)
    scale = jnp.where(lane >= f_u, inv, jnp.float32(1.0))      # (T, F)
    out_ref[...] = (x * scale).astype(out_ref.dtype)


def tr_norm(x, dims, threshold=1e-6, trnorm_on_abs=True, *,
            approx_reciprocal=False, max_block_bytes=2 * 1024 * 1024):
    """Pallas implementation of TrNorm.forward.

    x: [B, X, D + n_loops, N, N, 2]  (same axis convention as the PyTorch module).
    """
    D = len(dims)
    B, X, V, N, N2, C = x.shape
    assert N == N2 and V > D
    L = V - D

    rows = B * X
    F = V * N * N * C            # full per-site feature width (u + w)
    f_u = D * N * N * C          # first f_u columns are the link part u (untouched)

    x2 = x.reshape(rows, F)      # free reshape (contiguous dims only) -> no HBM copy

    # Constant diagonal selector (c-major columns, zero-padded to 128 lanes):
    #   sel[f_u + ((v*N + i)*N + i)*C + c, c*L + v] = 1
    n_sel = 128
    sel_np = np.zeros((F, n_sel), dtype=np.float32)
    for v in range(L):
        for c in range(C):
            for i in range(N):
                sel_np[f_u + ((v * N + i) * N + i) * C + c, c * L + v] = 1.0
    sel = jnp.asarray(sel_np)

    # Row tiling: big blocks (~max_block_bytes each), full width F on the lane axis so
    # HBM DMAs are contiguous.  Double-buffered in+out stays well under scoped VMEM on
    # v5e (16 MiB), v6e (32 MiB) and v7x (32 MiB default of 64 MiB physical).
    elem_bytes = x.dtype.itemsize
    tile_rows = max(8, (max_block_bytes // (F * elem_bytes)) // 8 * 8)
    if rows <= tile_rows:
        tile_rows = rows                       # single full-extent block
    grid = (pl.cdiv(rows, tile_rows),)         # partial last block handled by Pallas

    kernel = functools.partial(
        _trnorm_kernel, n_loops=L, n_c=C, f_u=f_u,
        threshold=float(threshold), trnorm_on_abs=bool(trnorm_on_abs),
        approx_reciprocal=bool(approx_reciprocal))

    out2 = pl.pallas_call(
        kernel,
        out_shape=jax.ShapeDtypeStruct((rows, F), x2.dtype),
        grid_spec=pltpu.PrefetchScalarGridSpec(
            num_scalar_prefetch=0,
            grid=grid,
            in_specs=[
                pl.BlockSpec((F, n_sel), lambda r: (0, 0)),       # selector: fetched once
                pl.BlockSpec((tile_rows, F), lambda r: (r, 0)),   # x row tile
            ],
            out_specs=pl.BlockSpec((tile_rows, F), lambda r: (r, 0)),
        ),
        compiler_params=pltpu.CompilerParams(
            dimension_semantics=("parallel",)),                   # megacore over row tiles
    )(sel, x2)

    return out2.reshape(B, X, V, N, N, C)


def tr_norm_ref(x, dims, threshold=1e-6, trnorm_on_abs=True):
    """Pure-JAX reference mirroring the PyTorch forward exactly."""
    D = len(dims)
    u, w = x[:, :, :D], x[:, :, D:]
    tr = jnp.einsum('bxviic->bxvc', w)
    if trnorm_on_abs:
        tr_abs = jnp.linalg.norm(tr, axis=-1)
        norm_factor = jnp.maximum(jnp.mean(tr_abs, axis=2), threshold)
    else:
        tr_mean = jnp.mean(tr, axis=2)
        norm_factor = jnp.maximum(jnp.linalg.norm(tr_mean, axis=-1), threshold)
    w_norm = w * (1.0 / norm_factor)[:, :, None, None, None, None]
    return jnp.concatenate([u, w_norm], axis=2)


if __name__ == "__main__":
    # dims=[8,8] -> D=2 link directions, 64 sites; 3 Wilson loops; SU(3)-like rep_dim=3.
    dims = [8, 8]
    B, X, V, N, C = 2, 64, 5, 3, 2   # x: [batch, sites, D + loops, N, N, 2]
    key = jax.random.PRNGKey(0)
    x = jax.random.normal(key, (B, X, V, N, N, C), dtype=jnp.float32)

    # Both normalization modes, single large block.
    for on_abs in (True, False):
        y = tr_norm(x, dims, threshold=1e-6, trnorm_on_abs=on_abs)
        y = jax.block_until_ready(y)
        y_ref = tr_norm_ref(x, dims, threshold=1e-6, trnorm_on_abs=on_abs)
        assert y.shape == x.shape
        err = float(jnp.max(jnp.abs(y - y_ref)))
        assert jnp.allclose(y, y_ref, atol=1e-5, rtol=1e-5), err

    # Multi-block path with a partial last block (tile_rows=48 -> grid=3, last block 32 rows).
    F_test = V * N * N * C
    y_small = tr_norm(x, dims, threshold=1e-6, trnorm_on_abs=True,
                      max_block_bytes=48 * F_test * 4)
    y_small = jax.block_until_ready(y_small)
    y_ref = tr_norm_ref(x, dims, threshold=1e-6, trnorm_on_abs=True)
    assert jnp.allclose(y_small, y_ref, atol=1e-5, rtol=1e-5)

    print("KERNEL_OK")
</pallas_src>

<mosaic_0001>
module attributes {stable_mosaic.version = 11 : i64} {
  func.func @_trnorm_kernel(%arg0: i32, %arg1: memref<90x128xf32, #tpu.memory_space<vmem>>, %arg2: memref<128x90xf32, #tpu.memory_space<vmem>>, %arg3: memref<128x90xf32, #tpu.memory_space<vmem>>) attributes {dimension_semantics = [#tpu.dimension_semantics<parallel>], iteration_bounds = array<i64: 1>, scalar_prefetch = 0 : i64, scratch_operands = 0 : i64, tpu.core_type = #tpu.core_type<tc>, window_params = [{pipeline_mode = #tpu.pipeline_mode<synchronous>, transform_indices = @transform_0, window_bounds = array<i64: 90, 128>}, {transform_indices = @transform_1, window_bounds = array<i64: 128, 90>}, {transform_indices = @transform_2, window_bounds = array<i64: 128, 90>}]} {
    %c0 = arith.constant 0 : index
    %c0_0 = arith.constant 0 : index
    %0 = vector.load %arg2[%c0, %c0_0] : memref<128x90xf32, #tpu.memory_space<vmem>>, vector<128x90xf32>
    %c0_1 = arith.constant 0 : index
    %c0_2 = arith.constant 0 : index
    %1 = vector.load %arg1[%c0_1, %c0_2] : memref<90x128xf32, #tpu.memory_space<vmem>>, vector<90x128xf32>
    %cst = arith.constant dense<0.000000e+00> : vector<128x128xf32>
    %2 = tpu.matmul %0, %1, %cst {dimension_numbers = #tpu.dot_dimension_numbers<[1], [0], [0], [1], [0, 0, 1, 1], [], []>, precision = #tpu.contract_precision<fp32>} : vector<128x90xf32>, vector<90x128xf32>, vector<128x128xf32> -> vector<128x128xf32>
    %3 = arith.mulf %2, %2 : vector<128x128xf32>
    %4 = vector.extract_strided_slice %3 {offsets = [0, 0], sizes = [128, 3], strides = [1, 1]} : vector<128x128xf32> to vector<128x3xf32>
    %5 = vector.extract_strided_slice %3 {offsets = [0, 3], sizes = [128, 3], strides = [1, 1]} : vector<128x128xf32> to vector<128x3xf32>
    %6 = arith.addf %4, %5 : vector<128x3xf32>
    %7 = math.sqrt %6 : vector<128x3xf32>
    %cst_3 = arith.constant dense<0.000000e+00> : vector<128xf32>
    %8 = vector.multi_reduction <add>, %7, %cst_3 [1] : vector<128x3xf32> to vector<128xf32>
    %9 = vector.shape_cast %8 : vector<128xf32> to vector<128x1xf32>
    %cst_4 = arith.constant 0.333333343 : f32
    %10 = vector.broadcast %cst_4 : f32 to vector<128x1xf32>
    %11 = arith.mulf %9, %10 : vector<128x1xf32>
    %cst_5 = arith.constant 9.99999997E-7 : f32
    %12 = vector.broadcast %cst_5 : f32 to vector<128x1xf32>
    %13 = arith.maximumf %11, %12 : vector<128x1xf32>
    %14 = tpu.reciprocal %13 : vector<128x1xf32> -> vector<128x1xf32>
    %15 = tpu.iota {dimensions = array<i32: 1>} : vector<1x90xi32>
    %c36_i32 = arith.constant 36 : i32
    %16 = vector.broadcast %c36_i32 : i32 to vector<1x90xi32>
    %17 = arith.cmpi sge, %15, %16 : vector<1x90xi32>
    %cst_6 = arith.constant 1.000000e+00 : f32
    %18 = vector.shape_cast %17 : vector<1x90xi1> to vector<1x90xi1>
    %19 = vector.broadcast %18 : vector<1x90xi1> to vector<128x90xi1>
    %20 = vector.shape_cast %14 : vector<128x1xf32> to vector<128x1xf32>
    %21 = vector.broadcast %20 : vector<128x1xf32> to vector<128x90xf32>
    %22 = vector.broadcast %cst_6 : f32 to vector<128x90xf32>
    %23 = arith.select %19, %21, %22 : vector<128x90xi1>, vector<128x90xf32>
    %24 = arith.mulf %0, %23 : vector<128x90xf32>
    %c0_7 = arith.constant 0 : index
    %c0_8 = arith.constant 0 : index
    %25 = vector.load %arg3[%c0_7, %c0_8] : memref<128x90xf32, #tpu.memory_space<vmem>>, vector<128x90xf32>
    tpu.vector_store %arg3[%c0_7, %c0_8], %24 {strides = array<i32>} : memref<128x90xf32, #tpu.memory_space<vmem>>, vector<128x90xf32>,
    return
  }
  func.func @transform_0(%arg0: i32) -> (i32, i32) {
    %c0_i32 = arith.constant 0 : i32
    %c0_i32_0 = arith.constant 0 : i32
    %c0_i32_1 = arith.constant 0 : i32
    return %c0_i32, %c0_i32_0 : i32, i32
  }
  func.func @transform_1(%arg0: i32) -> (i32, i32) {
    %c0_i32 = arith.constant 0 : i32
    %c0_i32_0 = arith.constant 0 : i32
    return %arg0, %c0_i32 : i32, i32
  }
  func.func @transform_2(%arg0: i32) -> (i32, i32) {
    %c0_i32 = arith.constant 0 : i32
    %c0_i32_0 = arith.constant 0 : i32
    return %arg0, %c0_i32 : i32, i32
  }
}

</mosaic_0001>

<bundles_post_ra>
// kernel: tpu_custom_call.1
= control target key start
LH: loop header
LB: loop body
LE: loop exit
PB: predicated region body
PF: predicated region fallthrough
CT: control target
= control target key end

     0   :  { %vm88_vm0 = vcmask 1041408   ;;  %vm39_vm1 = vcmask 736256   ;;  %s1601_s8 = smov 125   ;;  %vm1134_vm4 = vcmask 23552   ;;  %s2497_s0 = inlined_call_operand.vmem [shape: f32[90,128], index: 0, kind: input, shape index: {}]   ;;  %s2498_s1 = inlined_call_operand.vmem [shape: f32[128,90], index: 1, kind: input, shape index: {}]   ;;  %s2499_s2 = inlined_call_operand.vmem [shape: f32[128,90], index: 2, kind: output, shape index: {}]  }
   0x1   :  { %v38_v0 = vld [vmem:[%s2497_s0 + $0x58] sm:$0x3]  ;;  %v37_v1 = vld [vmem:[%s2497_s0 + $0x50] sm:$0xff]  ;;  %v36_v2 = vld [vmem:[%s2497_s0 + $0x48] sm:$0xff] }
   0x2   :  { %v90_v3 = vsel %vm88_vm0, %v38_v0, 0  ;;  %v1626_v4 = vand.u32 4294901760, %v37_v1  ;;  %v1628_v5 = vand.u32 4294901760, %v36_v2  ;;  %v35_v6 = vld [vmem:[%s2497_s0 + $0x40] sm:$0xff]  ;;  %v34_v7 = vld [vmem:[%s2497_s0 + $0x38] sm:$0xff]  ;;  %v33_v8 = vld [vmem:[%s2497_s0 + $0x30] sm:$0xff] }
   0x3   :  { %v1639_v9 = vand.u32 4294901760, %v90_v3  ;;  %v1641_v10 = vand.u32 4294901760, %v35_v6  ;;  %v1643_v11 = vand.u32 4294901760, %v34_v7  ;;  %v1645_v12 = vand.u32 4294901760, %v33_v8  ;;  %v32_v13 = vld [vmem:[%s2497_s0 + $0x28] sm:$0xff]  ;;  %v31_v17 = vld [vmem:[%s2497_s0 + $0x20] sm:$0xff] }
   0x4   :  { %v1651_v14 = vsub.f32 %v37_v1, %v1626_v4  ;;  %v1653_v15 = vand.u32 4294901760, %v32_v13  ;;  %v1656_v16 = vsub.f32 %v36_v2, %v1628_v5  ;;  %v30_v23 = vld [vmem:[%s2497_s0 + $0x18] sm:$0xff]  ;;  %v1682_v26 = vand.u32 4294901760, %v31_v17  ;;  %v29_v28 = vld [vmem:[%s2497_s0 + $0x10] sm:$0xff]  ;;  %v28_v35 = vld [vmem:[%s2497_s0 + $0x8] sm:$0xff] }
   0x5   :  { %1496 = vmatpush.msra.mxu2 %v1639_v9  ;;  %v1663_v18 = vsub.f32 %v90_v3, %v1639_v9  ;;  %v1666_v19 = vsub.f32 %v35_v6, %v1641_v10  ;;  %97 = vmatpush.msra.mxu0 %v1639_v9  ;;  %v1670_v20 = vsub.f32 %v34_v7, %v1643_v11  ;;  %v1702_v33 = vand.u32 4294901760, %v30_v23  ;;  %v19_v36 = vld [vmem:[%s2498_s1 + $0x40] sm:$0xff]  ;;  %v20_v44 = vld [vmem:[%s2498_s1 + $0x48] sm:$0xff]  ;;  %v21_v7 = vld [vmem:[%s2498_s1 + $0x50] sm:$0xff] }
   0x6   :  { %v261_v21 = vand.u32 4294901760, %v1651_v14  ;;  %v267_v22 = vand.u32 4294901760, %v1656_v16  ;;  %v1678_v24 = vsub.f32 %v33_v8, %v1645_v12  ;;  %v1693_v30 = vsub.f32 %v32_v13, %v1653_v15  ;;  %v27_v42 = vld [vmem:[%s2497_s0] sm:$0xff]  ;;  %v12_v8 = vld [vmem:[%s2498_s1 + $0x8] sm:$0xff] }
   0x7   :  { %1497 = vmatpush.msra.mxu2 %v1626_v4  ;;  %v255_v25 = vand.u32 4294901760, %v1663_v18  ;;  %v273_v27 = vand.u32 4294901760, %v1666_v19  ;;  %99 = vmatpush.msra.mxu0 %v1626_v4  ;;  %v279_v34 = vand.u32 4294901760, %v1670_v20  ;;  %v1712_v37 = vand.u32 4294901760, %v29_v28  ;;  %v11_v52 = vld [vmem:[%s2498_s1] sm:$0xff] }
   0x8   :  { %v262_v29 = vsub.f32 %v1651_v14, %v261_v21  ;;  %v268_v32 = vsub.f32 %v1656_v16, %v267_v22  ;;  %v285_v38 = vand.u32 4294901760, %v1678_v24  ;;  %v1724_v43 = vsub.f32 %v31_v17, %v1682_v26 }
   0x9   :  { %1498 = vmatpush.msra.mxu2 %v1628_v5  ;;  %v256_v31 = vsub.f32 %v1663_v18, %v255_v25  ;;  %101 = vmatpush.msra.mxu0 %v1628_v5  ;;  %v274_v41 = vsub.f32 %v1666_v19, %v273_v27  ;;  %v1729_v45 = vand.u32 4294901760, %v28_v35  ;;  %v291_v46 = vand.u32 4294901760, %v1693_v30 }
   0xa   :  { %v263_v40 = vand.u32 4294901760, %v262_v29  ;;  %v65_v47 = vsel %vm39_vm1, %v19_v36, 0  ;;  %v269_v48 = vand.u32 4294901760, %v268_v32  ;;  %v280_v49 = vsub.f32 %v1670_v20, %v279_v34 }
   0xb   :  { %1499 = vmatpush.msra.mxu2 %v1641_v10  ;;  %v257_v39 = vand.u32 4294901760, %v256_v31  ;;  %103 = vmatpush.msra.mxu0 %v1641_v10  ;;  %v1737_v50 = vand.u32 4294901760, %v65_v47  ;;  %v1740_v51 = vsub.f32 %v30_v23, %v1702_v33  ;;  %v286_v53 = vsub.f32 %v1678_v24, %v285_v38 }
   0xc   :  { %v1748_v54 = vand.u32 4294901760, %v27_v42  ;;  %v68_v55 = vsel %vm39_vm1, %v20_v44, 0  ;;  %v275_v56 = vand.u32 4294901760, %v274_v41  ;;  %v297_v57 = vand.u32 4294901760, %v1724_v43  ;;  %v13_v44 = vld [vmem:[%s2498_s1 + $0x10] sm:$0xff] }
   0xd   :  { %1500 = vmatpush.msra.mxu2 %v1643_v11  ;;  %1508 = vmatpush.msra.mxu3 %v257_v39  ;;  %v1755_v58 = vsub.f32 %v65_v47, %v1737_v50  ;;  %v1758_v59 = vsub.f32 %v29_v28, %v1712_v37  ;;  %v292_v60 = vsub.f32 %v1693_v30, %v291_v46  ;;  %v1764_v61 = vand.u32 4294901760, %v68_v55 }
   0xe   :  { %258 = vmatpush.msra.mxu1 %v257_v39  ;;  %105 = vmatpush.msra.mxu0 %v1643_v11  ;;  %v41_v62 = vsel %vm39_vm1, %v11_v52, 0  ;;  %v281_v63 = vand.u32 4294901760, %v280_v49  ;;  %v303_v1 = vand.u32 4294901760, %v1740_v51  ;;  %v1771_v2 = vsub.f32 %v28_v35, %v1729_v45 }
   0xf   :  { %1501 = vmatpush.msra.mxu2 %v1645_v12  ;;  %1509 = vmatpush.msra.mxu3 %v263_v40  ;;  %v2500_v0 = vand.u32 4294901760, %v1755_v58  ;;  %v287_v3 = vand.u32 4294901760, %v286_v53  ;;  %v1774_v6 = vand.u32 4294901760, %v41_v62  ;;  %v298_v13 = vsub.f32 %v1724_v43, %v297_v57 }
  0x10   :  { %264 = vmatpush.msra.mxu1 %v263_v40  ;;  %107 = vmatpush.msra.mxu0 %v1645_v12  ;;  %v309_v17 = vand.u32 4294901760, %v1758_v59  ;;  %v1788_v23 = vsub.f32 %v27_v42, %v1748_v54  ;;  %v1791_v28 = vsub.f32 %v68_v55, %v1764_v61  ;;  %v293_v29 = vand.u32 4294901760, %v292_v60 }
  0x11   :  { %1502 = vmatpush.msra.mxu2 %v1653_v15  ;;  %1510 = vmatpush.msra.mxu3 %v269_v48  ;;  %v187_v31 = vsub.f32 %v1755_v58, %v2500_v0  ;;  %v1798_v32 = vsub.f32 %v41_v62, %v1774_v6  ;;  %v304_v35 = vsub.f32 %v1740_v51, %v303_v1  ;;  %v315_v36 = vand.u32 4294901760, %v1771_v2  ;;  %v22_v62 = vld [vmem:[%s2498_s1 + $0x58] sm:$0xff] }
  0x12   :  { %270 = vmatpush.msra.mxu1 %v269_v48  ;;  %109 = vmatpush.msra.mxu0 %v1653_v15  ;;  %v71_v39 = vsel %vm39_vm1, %v21_v7, 0  ;;  %v44_v40 = vsel %vm39_vm1, %v12_v8, 0  ;;  %v299_v47 = vand.u32 4294901760, %v298_v13  ;;  %v310_v48 = vsub.f32 %v1758_v59, %v309_v17 }
  0x13   :  { %1503 = vmatpush.msra.mxu2 %v1682_v26  ;;  %1511 = vmatpush.msra.mxu3 %v275_v56  ;;  %v122_v41 = vand.u32 4294901760, %v1798_v32  ;;  %v1809_v42 = vand.u32 4294901760, %v44_v40  ;;  %v321_v49 = vand.u32 4294901760, %v1788_v23  ;;  %v194_v52 = vand.u32 4294901760, %v1791_v28 }
  0x14   :  { %276 = vmatpush.msra.mxu1 %v275_v56  ;;  %111 = vmatpush.msra.mxu0 %v1682_v26  ;;  %v188_v53 = vand.u32 4294901760, %v187_v31  ;;  %v1824_v56 = vand.u32 4294901760, %v71_v39  ;;  %v47_v7 = vsel %vm39_vm1, %v13_v44, 0  ;;  %v311_v8 = vand.u32 4294901760, %v310_v48 }
  0x15   :  { %1504 = vmatpush.msra.mxu2 %v1702_v33  ;;  %1512 = vmatpush.msra.mxu3 %v281_v63  ;;  %v123_v55 = vsub.f32 %v1798_v32, %v122_v41  ;;  %v1827_v60 = vsub.f32 %v44_v40, %v1809_v42  ;;  %v322_v13 = vsub.f32 %v1788_v23, %v321_v49  ;;  %v1850_v0 = vand.u32 4294901760, %v47_v7 }
  0x16   :  { %282 = vmatpush.msra.mxu1 %v281_v63  ;;  %113 = vmatpush.msra.mxu0 %v1702_v33  ;;  %v305_v63 = vand.u32 4294901760, %v304_v35  ;;  %v195_v31 = vsub.f32 %v1791_v28, %v194_v52  ;;  %v74_v35 = vsel %vm39_vm1, %v22_v62, 0 }
  0x17   :  { %1505 = vmatpush.msra.mxu2 %v1712_v37  ;;  %1513 = vmatpush.msra.mxu3 %v287_v3  ;;  %v124_v40 = vand.u32 4294901760, %v123_v55  ;;  %v130_v44 = vand.u32 4294901760, %v1827_v60 }
  0x18   :  { %288 = vmatpush.msra.mxu1 %v287_v3  ;;  %115 = vmatpush.msra.mxu0 %v1712_v37  ;;  %v316_v3 = vsub.f32 %v1771_v2, %v315_v36  ;;  %v196_v55 = vand.u32 4294901760, %v195_v31 }
  0x19   :  { %1506 = vmatpush.msra.mxu2 %v1729_v45  ;;  %1514 = vmatpush.msra.mxu3 %v293_v29 }
  0x1a   :  { %294 = vmatpush.msra.mxu1 %v293_v29  ;;  %117 = vmatpush.msra.mxu0 %v1729_v45  ;;  %v1847_v29 = vsub.f32 %v71_v39, %v1824_v56  ;;  %v317_v48 = vand.u32 4294901760, %v316_v3  ;;  %v1858_v39 = vand.u32 4294901760, %v74_v35  ;;  %v1865_v3 = vsub.f32 %v47_v7, %v1850_v0 }
  0x1b   :  { %1507 = vmatpush.msra.mxu2 %v1748_v54  ;;  %1515 = vmatpush.msra.mxu3 %v299_v47 }
  0x1c   :  { %189 = vmatmul.f32.vlgmr.msra.gmra.mxu2 %v188_v53  ;;  %300 = vmatpush.msra.mxu1 %v299_v47  ;;  %v14_v53 = vld [vmem:[%s2498_s1 + $0x18] sm:$0xff]  ;;  %v323_v47 = vand.u32 4294901760, %v322_v13  ;;  %v202_v62 = vand.u32 4294901760, %v1847_v29  ;;  %v23_v13 = vld [vmem:[%s2498_s1 + $0x60] sm:$0xff]  ;;  %v1877_v7 = vsub.f32 %v74_v35, %v1858_v39 }
  0x1d   :  { %1516 = vmatpush.msra.mxu3 %v305_v63  ;;  %396 = vmatpush.msrb.mxu2 %v1663_v18  ;;  %v77_v31 = vsel %vm39_vm1, %v23_v13, 0 }
  0x1e   :  { %306 = vmatpush.msra.mxu1 %v305_v63  ;;  %119 = vmatpush.msra.mxu0 %v1748_v54  ;;  %v131_v63 = vsub.f32 %v1827_v60, %v130_v44  ;;  %v203_v18 = vsub.f32 %v1847_v29, %v202_v62 }
  0x1f   :  { %1517 = vmatpush.msra.mxu3 %v311_v8  ;;  %399 = vmatpush.msrb.mxu2 %v1651_v14  ;;  %v15_v14 = vld [vmem:[%s2498_s1 + $0x20] sm:$0xff] }
  0x20   :  { %312 = vmatpush.msra.mxu1 %v311_v8  ;;  %125 = vmatmul.f32.vlgmr.msra.gmra.mxu0 %v124_v40  ;;  %v50_v8 = vsel %vm39_vm1, %v14_v53, 0  ;;  %v138_v40 = vand.u32 4294901760, %v1865_v3  ;;  %v204_v35 = vand.u32 4294901760, %v203_v18  ;;  %v210_v53 = vand.u32 4294901760, %v1877_v7 }
  0x21   :  { %1518 = vmatpush.msra.mxu3 %v317_v48  ;;  %643 = vmatpush.msrb.mxu0 %v255_v25  ;;  %v132_v25 = vand.u32 4294901760, %v131_v63  ;;  %v24_v63 = vld [vmem:[%s2498_s1 + $0x68] sm:$0xff] }
  0x22   :  { %318 = vmatpush.msra.mxu1 %v317_v48  ;;  %402 = vmatpush.msrb.mxu2 %v1656_v16  ;;  %v1885_v48 = vand.u32 4294901760, %v50_v8 }
  0x23   :  { %1519 = vmatpush.msra.mxu3 %v323_v47  ;;  %647 = vmatpush.msrb.mxu0 %v261_v21  ;;  %v1895_v21 = vand.u32 4294901760, %v77_v31 }
  0x24   :  { %197 = vmatmul.f32.gmra.mxu2 %v196_v55  ;;  %358 = vmatmul.f32.vlgmr.msra.gmra.mxu3 %v1737_v50  ;;  %v1903_v55 = vsub.f32 %v50_v8, %v1885_v48  ;;  %v80_v8 = vsel %vm39_vm1, %v24_v63, 0 }
  0x25   :  { %516 = vmatpush.msrb.mxu3 %v1639_v9  ;;  %324 = vmatpush.msra.mxu1 %v323_v47  ;;  %v139_v47 = vsub.f32 %v1865_v3, %v138_v40  ;;  %v1917_v13 = vsub.f32 %v77_v31, %v1895_v21 }
  0x26   :  { %326 = vmatmul.f32.vlgmr.msra.gmra.mxu1 %v1774_v6  ;;  %405 = vmatpush.msrb.mxu2 %v1666_v19 }
  0x27   :  { %518 = vmatpush.msrb.mxu3 %v1626_v4  ;;  %758 = vmatpush.msrb.mxu1 %v1639_v9  ;;  %v53_v9 = vsel %vm39_vm1, %v15_v14, 0  ;;  %v140_v16 = vand.u32 4294901760, %v139_v47  ;;  %v218_v31 = vand.u32 4294901760, %v1917_v13 }
  0x28   :  { %133 = vmatmul.f32.gmra.mxu0 %v132_v25  ;;  %408 = vmatpush.msrb.mxu2 %v1670_v20  ;;  %v1925_v18 = vand.u32 4294901760, %v53_v9  ;;  %v1938_v25 = vand.u32 4294901760, %v80_v8 }
  0x29   :  { %520 = vmatpush.msrb.mxu3 %v1628_v5  ;;  %760 = vmatpush.msrb.mxu1 %v1626_v4  ;;  %v211_v4 = vsub.f32 %v1877_v7, %v210_v53  ;;  %v219_v47 = vsub.f32 %v1917_v13, %v218_v31 }
  0x2a   :  { %651 = vmatpush.msrb.mxu0 %v267_v22  ;;  %411 = vmatpush.msrb.mxu2 %v1678_v24  ;;  %v146_v22 = vand.u32 4294901760, %v1903_v55  ;;  %v1960_v63 = vsub.f32 %v80_v8, %v1938_v25  ;;  %v17_v24 = vld [vmem:[%s2498_s1 + $0x30] sm:$0xff] }
  0x2b   :  { %522 = vmatpush.msrb.mxu3 %v1641_v10  ;;  %762 = vmatpush.msrb.mxu1 %v1628_v5  ;;  %v16_v5 = vld [vmem:[%s2498_s1 + $0x28] sm:$0xff]  ;;  %v212_v14 = vand.u32 4294901760, %v211_v4  ;;  %v220_v8 = vand.u32 4294901760, %v219_v47  ;;  %v26_v4 = vld [vmem:[%s2498_s1 + $0x78] sm:$0xff] }
  0x2c   :  { %205 = vmatmul.f32.gmra.mxu2 %v204_v35  ;;  %362 = vmatmul.f32.gmra.mxu3 %v1764_v61  ;;  %v147_v19 = vsub.f32 %v1903_v55, %v146_v22  ;;  %v56_v35 = vsel %vm39_vm1, %v16_v5, 0 }
  0x2d   :  { %524 = vmatpush.msrb.mxu3 %v1643_v11  ;;  %655 = vmatpush.msrb.mxu0 %v273_v27  ;;  %v1945_v27 = vsub.f32 %v53_v9, %v1925_v18  ;;  %v1968_v9 = vand.u32 4294901760, %v56_v35 }
  0x2e   :  { %330 = vmatmul.f32.gmra.mxu1 %v1809_v42  ;;  %414 = vmatpush.msrb.mxu2 %v1693_v30  ;;  %v148_v20 = vand.u32 4294901760, %v147_v19 }
  0x2f   :  { %764 = vmatpush.msrb.mxu1 %v1641_v10  ;;  %526 = vmatpush.msrb.mxu3 %v1645_v12  ;;  %v25_v10 = vld [vmem:[%s2498_s1 + $0x70] sm:$0xff] }
  0x30   :  { %141 = vmatmul.f32.gmra.mxu0 %v140_v16  ;;  %417 = vmatpush.msrb.mxu2 %v1724_v43 }
  0x31   :  { %659 = vmatpush.msrb.mxu0 %v279_v34  ;;  %528 = vmatpush.msrb.mxu3 %v1653_v15  ;;  %v83_v34 = vsel %vm39_vm1, %v25_v10, 0 }
  0x32   :  { %766 = vmatpush.msrb.mxu1 %v1643_v11  ;;  %420 = vmatpush.msrb.mxu2 %v1740_v51  ;;  %v154_v11 = vand.u32 4294901760, %v1945_v27 }
  0x33   :  { %663 = vmatpush.msrb.mxu0 %v285_v38  ;;  %530 = vmatpush.msrb.mxu3 %v1682_v26  ;;  %v1978_v38 = vand.u32 4294901760, %v83_v34 }
  0x34   :  { %213 = vmatmul.f32.gmra.mxu2 %v212_v14  ;;  %366 = vmatmul.f32.gmra.mxu3 %v1824_v56  ;;  %v155_v30 = vsub.f32 %v1945_v27, %v154_v11  ;;  %v86_v14 = vsel %vm39_vm1, %v26_v4, 0 }
  0x35   :  { %768 = vmatpush.msrb.mxu1 %v1645_v12  ;;  %667 = vmatpush.msrb.mxu0 %v291_v46  ;;  %v226_v12 = vand.u32 4294901760, %v1960_v63  ;;  %v1987_v46 = vsub.f32 %v56_v35, %v1968_v9  ;;  %v2000_v16 = vsub.f32 %v83_v34, %v1978_v38 }
  0x36   :  { %334 = vmatmul.f32.gmra.mxu1 %v1850_v0  ;;  %532 = vmatpush.msrb.mxu3 %v1702_v33  ;;  %v156_v43 = vand.u32 4294901760, %v155_v30 }
  0x37   :  { %770 = vmatpush.msrb.mxu1 %v1653_v15  ;;  %423 = vmatpush.msrb.mxu2 %v1758_v59  ;;  %v59_v15 = vsel %vm39_vm1, %v17_v24, 0  ;;  %v234_v51 = vand.u32 4294901760, %v2000_v16 }
  0x38   :  { %149 = vmatmul.f32.gmra.mxu0 %v148_v20  ;;  %534 = vmatpush.msrb.mxu3 %v1712_v37  ;;  %v2010_v5 = vand.u32 4294901760, %v59_v15 }
  0x39   :  { %671 = vmatpush.msrb.mxu0 %v297_v57  ;;  %772 = vmatpush.msrb.mxu1 %v1682_v26  ;;  %v227_v26 = vsub.f32 %v1960_v63, %v226_v12  ;;  %v162_v57 = vand.u32 4294901760, %v1987_v46 }
  0x3a   :  { %426 = vmatpush.msrb.mxu2 %v1771_v2  ;;  %536 = vmatpush.msrb.mxu3 %v1729_v45  ;;  %v169_v19 = vsub.f32 %v59_v15, %v2010_v5 }
  0x3b   :  { %675 = vmatpush.msrb.mxu0 %v303_v1  ;;  %774 = vmatpush.msrb.mxu1 %v1702_v33  ;;  %v18_v33 = vld [vmem:[%s2498_s1 + $0x38] sm:$0xff]  ;;  %v228_v1 = vand.u32 4294901760, %v227_v26  ;;  %v163_v59 = vsub.f32 %v1987_v46, %v162_v57 }
  0x3c   :  { %221 = vmatmul.f32.gmra.mxu2 %v220_v8  ;;  %370 = vmatmul.f32.gmra.mxu3 %v1858_v39  ;;  %v62_v10 = vsel %vm39_vm1, %v18_v33, 0  ;;  %v170_v35 = vand.u32 4294901760, %v169_v19 }
  0x3d   :  { %429 = vmatpush.msrb.mxu2 %v1788_v23  ;;  %679 = vmatpush.msrb.mxu0 %v309_v17  ;;  %v2028_v17 = vand.u32 4294901760, %v86_v14  ;;  %v164_v2 = vand.u32 4294901760, %v163_v59  ;;  %v176_v47 = vand.u32 4294901760, %v62_v10 }
  0x3e   :  { %338 = vmatmul.f32.gmra.mxu1 %v1885_v48  ;;  %538 = vmatpush.msrb.mxu3 %v1748_v54 }
  0x3f   :  { %776 = vmatpush.msrb.mxu1 %v1712_v37  ;;  %683 = vmatpush.msrb.mxu0 %v315_v36  ;;  %v235_v37 = vsub.f32 %v2000_v16, %v234_v51  ;;  %v2041_v36 = vsub.f32 %v86_v14, %v2028_v17  ;;  %v177_v20 = vsub.f32 %v62_v10, %v176_v47 }
  0x40   :  { %157 = vmatmul.f32.gmra.mxu0 %v156_v43 }
  0x41   :  { %778 = vmatpush.msrb.mxu1 %v1729_v45  ;;  %687 = vmatpush.msrb.mxu0 %v321_v49  ;;  %v236_v45 = vand.u32 4294901760, %v235_v37  ;;  %v242_v23 = vand.u32 4294901760, %v2041_v36  ;;  %v171_v49 = vsub.f32 %v169_v19, %v170_v35  ;;  %v178_v24 = vand.u32 4294901760, %v177_v20 }
  0x43   :  { %780 = vmatpush.msrb.mxu1 %v1748_v54  ;;  %v243_v54 = vsub.f32 %v2041_v36, %v242_v23  ;;  %v172_v34 = vand.u32 4294901760, %v171_v49  ;;  %v179_v30 = vsub.f32 %v177_v20, %v178_v24 }
  0x44   :  { %229 = vmatmul.f32.gmra.mxu2 %v228_v1  ;;  %374 = vmatmul.f32.gmra.mxu3 %v1895_v21 }
  0x45   :  { %v244_v8 = vand.u32 4294901760, %v243_v54  ;;  %v180_v15 = vand.u32 4294901760, %v179_v30 }
  0x46   :  { %342 = vmatmul.f32.gmra.mxu1 %v1925_v18 }
  0x48   :  { %165 = vmatmul.f32.gmra.mxu0 %v164_v2 }
  0x4c   :  { %237 = vmatmul.f32.gmra.mxu2 %v236_v45  ;;  %378 = vmatmul.f32.gmra.mxu3 %v1938_v25 }
  0x4e   :  { %346 = vmatmul.f32.gmra.mxu1 %v1968_v9 }
  0x50   :  { %173 = vmatmul.f32.gmra.mxu0 %v172_v34 }
  0x54   :  { %245 = vmatmul.f32.gmra.mxu2 %v244_v8  ;;  %382 = vmatmul.f32.gmra.mxu3 %v1978_v38 }
  0x56   :  { %350 = vmatmul.f32.gmra.mxu1 %v2010_v5 }
  0x58   :  { %181 = vmatmul.f32.gmra.mxu0 %v180_v15 }
  0x5c   :  { %386 = vmatmul.f32.gmra.mxu3 %v2028_v17  ;;  %432 = vmatmul.f32.vlgmr.msrb.gmra.mxu2 %v1798_v32 }
  0x5e   :  { %354 = vmatmul.f32.gmra.mxu1 %v176_v47 }
  0x60   :  { %689 = vmatmul.f32.vlgmr.msrb.gmra.mxu0 %v1774_v6 }
  0x64   :  { %437 = vmatmul.f32.gmra.mxu2 %v1827_v60  ;;  %542 = vmatmul.f32.vlgmr.msrb.gmra.mxu3 %v122_v41  ;;  %v2501_v41 = vand.u32 4294901760, %v1755_v58 }
  0x66   :  { %782 = vmatmul.f32.vlgmr.msrb.gmra.mxu1 %v1774_v6 }
  0x68   :  { %693 = vmatmul.f32.gmra.mxu0 %v1809_v42 }
  0x6c   :  { %442 = vmatmul.f32.gmra.mxu2 %v1865_v3  ;;  %548 = vmatmul.f32.gmra.mxu3 %v130_v44 }
  0x6e   :  { %786 = vmatmul.f32.gmra.mxu1 %v1809_v42 }
  0x70   :  { %697 = vmatmul.f32.gmra.mxu0 %v1850_v0 }
  0x74   :  { %447 = vmatmul.f32.gmra.mxu2 %v1903_v55  ;;  %554 = vmatmul.f32.gmra.mxu3 %v138_v40 }
  0x76   :  { %790 = vmatmul.f32.gmra.mxu1 %v1850_v0 }
  0x78   :  { %701 = vmatmul.f32.gmra.mxu0 %v1885_v48 }
  0x7c   :  { %452 = vmatmul.f32.gmra.mxu2 %v1945_v27  ;;  %560 = vmatmul.f32.gmra.mxu3 %v146_v22 }
  0x7e   :  { %794 = vmatmul.f32.gmra.mxu1 %v1885_v48 }
  0x80   :  { %705 = vmatmul.f32.gmra.mxu0 %v1925_v18 }
  0x84   :  { %457 = vmatmul.f32.gmra.mxu2 %v1987_v46  ;;  %566 = vmatmul.f32.gmra.mxu3 %v154_v11 }
  0x86   :  { %798 = vmatmul.f32.gmra.mxu1 %v1925_v18 }
  0x88   :  { %709 = vmatmul.f32.gmra.mxu0 %v1968_v9 }
  0x8c   :  { %462 = vmatmul.f32.gmra.mxu2 %v169_v19  ;;  %572 = vmatmul.f32.gmra.mxu3 %v162_v57 }
  0x8e   :  { %802 = vmatmul.f32.gmra.mxu1 %v1968_v9 }
  0x90   :  { %713 = vmatmul.f32.gmra.mxu0 %v2010_v5 }
  0x94   :  { %467 = vmatmul.f32.gmra.mxu2 %v177_v20  ;;  %578 = vmatmul.f32.gmra.mxu3 %v170_v35 }
  0x96   :  { %806 = vmatmul.f32.gmra.mxu1 %v2010_v5 }
  0x98   :  { %717 = vmatmul.f32.gmra.mxu0 %v176_v47 }
  0x9c   :  { %472 = vmatmul.f32.gmra.mxu2 %v1755_v58  ;;  %584 = vmatmul.f32.gmra.mxu3 %v178_v24 }
  0x9d   :  { %v2086_v0 = vpop.f32.mrf.mxu0 }
  0x9e   :  { %810 = vmatmul.f32.gmra.mxu1 %v176_v47 }
  0x9f   :  { %v190_v6 = vpop.f32.mrf.mxu2 }
  0xa0   :  { %721 = vmatmul.f32.gmra.mxu0 %v1737_v50 }
  0xa3   :  { %v2089_v32 = vpop.f32.mrf.mxu1 }
  0xa4   :  { %477 = vmatmul.f32.gmra.mxu2 %v1791_v28  ;;  %590 = vmatmul.f32.gmra.mxu3 %v2501_v41 }
  0xa5   :  { %v2094_v42 = vpop.f32.mrf.mxu0 }
  0xa6   :  { %814 = vmatmul.f32.gmra.mxu1 %v1737_v50 }
  0xa7   :  { %v198_v60 = vpop.f32.mrf.mxu2  ;;  %v359_v44 = vpop.f32.mrf.mxu3 }
  0xa8   :  { %v2097_v3 = vadd.f32 %v359_v44, %v190_v6  ;;  %725 = vmatmul.f32.gmra.mxu0 %v1764_v61 }
  0xab   :  { %v2100_v40 = vpop.f32.mrf.mxu1 }
  0xac   :  { %482 = vmatmul.f32.gmra.mxu2 %v1847_v29  ;;  %596 = vmatmul.f32.gmra.mxu3 %v194_v52 }
  0xad   :  { %v2105_v48 = vpop.f32.mrf.mxu0 }
  0xae   :  { %818 = vmatmul.f32.gmra.mxu1 %v1764_v61 }
  0xaf   :  { %v206_v58 = vpop.f32.mrf.mxu2  ;;  %v363_v55 = vpop.f32.mrf.mxu3 }
  0xb0   :  { %v2108_v50 = vadd.f32 %v363_v55, %v198_v60  ;;  %729 = vmatmul.f32.gmra.mxu0 %v1824_v56 }
  0xb3   :  { %v2111_v22 = vpop.f32.mrf.mxu1 }
  0xb4   :  { %487 = vmatmul.f32.gmra.mxu2 %v1877_v7  ;;  %602 = vmatmul.f32.gmra.mxu3 %v202_v62  ;;  %v336_v30 = vadd.f32 %v2111_v22, %v2105_v48 }
  0xb5   :  { %v2116_v18 = vpop.f32.mrf.mxu0 }
  0xb6   :  { %822 = vmatmul.f32.gmra.mxu1 %v1824_v56 }
  0xb7   :  { %v214_v28 = vpop.f32.mrf.mxu2  ;;  %v367_v52 = vpop.f32.mrf.mxu3 }
  0xb8   :  { %v2119_v61 = vadd.f32 %v367_v52, %v206_v58  ;;  %733 = vmatmul.f32.gmra.mxu0 %v1858_v39 }
  0xbb   :  { %v2122_v27 = vpop.f32.mrf.mxu1 }
  0xbc   :  { %492 = vmatmul.f32.gmra.mxu2 %v1917_v13  ;;  %608 = vmatmul.f32.gmra.mxu3 %v210_v53  ;;  %v340_v58 = vadd.f32 %v2122_v27, %v2116_v18 }
  0xbd   :  { %v2127_v11 = vpop.f32.mrf.mxu0 }
  0xbe   :  { %826 = vmatmul.f32.gmra.mxu1 %v1858_v39 }
  0xbf   :  { %v222_v29 = vpop.f32.mrf.mxu2  ;;  %v371_v62 = vpop.f32.mrf.mxu3 }
  0xc0   :  { %v2130_v56 = vadd.f32 %v371_v62, %v214_v28  ;;  %737 = vmatmul.f32.gmra.mxu0 %v1895_v21 }
  0xc3   :  { %v2133_v9 = vpop.f32.mrf.mxu1 }
  0xc4   :  { %497 = vmatmul.f32.gmra.mxu2 %v1960_v63  ;;  %614 = vmatmul.f32.gmra.mxu3 %v218_v31 }
  0xc5   :  { %v2138_v46 = vpop.f32.mrf.mxu0 }
  0xc6   :  { %830 = vmatmul.f32.gmra.mxu1 %v1895_v21 }
  0xc7   :  { %v230_v7 = vpop.f32.mrf.mxu2  ;;  %v375_v53 = vpop.f32.mrf.mxu3 }
  0xc8   :  { %v2141_v39 = vadd.f32 %v375_v53, %v222_v29  ;;  %741 = vmatmul.f32.gmra.mxu0 %v1938_v25 }
  0xcb   :  { %v2144_v4 = vpop.f32.mrf.mxu1 }
  0xcc   :  { %502 = vmatmul.f32.gmra.mxu2 %v2000_v16  ;;  %620 = vmatmul.f32.gmra.mxu3 %v226_v12 }
  0xcd   :  { %v2149_v26 = vpop.f32.mrf.mxu0 }
  0xce   :  { %834 = vmatmul.f32.gmra.mxu1 %v1938_v25 }
  0xcf   :  { %v238_v13 = vpop.f32.mrf.mxu2  ;;  %v379_v31 = vpop.f32.mrf.mxu3 }
  0xd0   :  { %v2152_v21 = vadd.f32 %v379_v31, %v230_v7  ;;  %745 = vmatmul.f32.gmra.mxu0 %v1978_v38 }
  0xd3   :  { %v2155_v43 = vpop.f32.mrf.mxu1 }
  0xd4   :  { %507 = vmatmul.f32.gmra.mxu2 %v2041_v36  ;;  %626 = vmatmul.f32.gmra.mxu3 %v234_v51  ;;  %v332_v36 = vadd.f32 %v2100_v40, %v2094_v42 }
  0xd5   :  { %v2160_v57 = vpop.f32.mrf.mxu0 }
  0xd6   :  { %838 = vmatmul.f32.gmra.mxu1 %v1978_v38  ;;  %v328_v38 = vadd.f32 %v2089_v32, %v2086_v0 }
  0xd7   :  { %v246_v63 = vpop.f32.mrf.mxu2  ;;  %v383_v12 = vpop.f32.mrf.mxu3 }
  0xd8   :  { %v2163_v25 = vadd.f32 %v383_v12, %v238_v13  ;;  %749 = vmatmul.f32.gmra.mxu0 %v2028_v17  ;;  %v344_v13 = vadd.f32 %v2133_v9, %v2127_v11 }
  0xdb   :  { %v2166_v5 = vpop.f32.mrf.mxu1 }
  0xdc   :  { %632 = vmatmul.f32.gmra.mxu3 %v242_v23 }
  0xdd   :  { %v690_v14 = vpop.f32.mrf.mxu0 }
  0xde   :  { %842 = vmatmul.f32.gmra.mxu1 %v2028_v17 }
  0xdf   :  { %v387_v16 = vpop.f32.mrf.mxu3  ;;  %v433_v33 = vpop.f32.mrf.mxu2 }
  0xe0   :  { %v2171_v51 = vadd.f32 %v387_v16, %v246_v63  ;;  %v434_v19 = vadd.f32 %v433_v33, %v328_v38  ;;  %v348_v38 = vadd.f32 %v2144_v4, %v2138_v46 }
  0xe3   :  { %v783_v1 = vpop.f32.mrf.mxu1 }
  0xe5   :  { %v694_v59 = vpop.f32.mrf.mxu0 }
  0xe7   :  { %v438_v10 = vpop.f32.mrf.mxu2  ;;  %v543_v37 = vpop.f32.mrf.mxu3 }
  0xe8   :  { %v544_v2 = vadd.f32 %v543_v37, %v434_v19  ;;  %v439_v23 = vadd.f32 %v438_v10, %v332_v36  ;;  %v352_v36 = vadd.f32 %v2155_v43, %v2149_v26 }
  0xea   :  { %v691_v35 = vadd.f32 %v690_v14, %v544_v2 }
  0xeb   :  { %v787_v47 = vpop.f32.mrf.mxu1 }
  0xec   :  { %v784_v45 = vadd.f32 %v783_v1, %v691_v35 }
  0xed   :  { %v698_v17 = vpop.f32.mrf.mxu0 }
  0xee   :  { %v2177_v49 = vmul.f32 %v784_v45, %v784_v45 }
  0xef   :  { %v443_v20 = vpop.f32.mrf.mxu2  ;;  %v549_v54 = vpop.f32.mrf.mxu3 }
  0xf0   :  { %v550_v34 = vadd.f32 %v549_v54, %v439_v23  ;;  %878 = vrot.lane.b32.xlu0 %v2177_v49, %s1601_s8  ;;  %v444_v6 = vadd.f32 %v443_v20, %v336_v30 }
  0xf2   :  { %v695_v24 = vadd.f32 %v694_v59, %v550_v34 }
  0xf3   :  { %v791_v8 = vpop.f32.mrf.mxu1 }
  0xf4   :  { %v788_v15 = vadd.f32 %v787_v47, %v695_v24 }
  0xf5   :  { %v702_v0 = vpop.f32.mrf.mxu0 }
  0xf6   :  { %v2183_v32 = vmul.f32 %v788_v15, %v788_v15 }
  0xf7   :  { %v448_v41 = vpop.f32.mrf.mxu2  ;;  %v555_v42 = vpop.f32.mrf.mxu3 }
  0xf8   :  { %v556_v60 = vadd.f32 %v555_v42, %v444_v6  ;;  %880 = vrot.lane.b32.xlu0 %v2183_v32, %s1601_s8  ;;  %v449_v52 = vadd.f32 %v448_v41, %v340_v58 }
  0xfa   :  { %v699_v44 = vadd.f32 %v698_v17, %v556_v60 }
  0xfb   :  { %v795_v40 = vpop.f32.mrf.mxu1 }
  0xfc   :  { %v792_v55 = vadd.f32 %v791_v8, %v699_v44  ;;  %v356_v8 = vadd.f32 %v2166_v5, %v2160_v57 }
  0xfd   :  { %v706_v28 = vpop.f32.mrf.mxu0 }
  0xfe   :  { %v2189_v48 = vmul.f32 %v792_v55, %v792_v55 }
  0xff   :  { %v453_v22 = vpop.f32.mrf.mxu2  ;;  %v561_v29 = vpop.f32.mrf.mxu3 }
 0x100   :  { %v562_v62 = vadd.f32 %v561_v29, %v449_v52  ;;  %882 = vrot.lane.b32.xlu1 %v2189_v48, %s1601_s8  ;;  %v454_v12 = vadd.f32 %v453_v22, %v344_v13 }
 0x102   :  { %v703_v7 = vadd.f32 %v702_v0, %v562_v62 }
 0x103   :  { %v799_v53 = vpop.f32.mrf.mxu1 }
 0x104   :  { %v796_v31 = vadd.f32 %v795_v40, %v703_v7 }
 0x105   :  { %v710_v63 = vpop.f32.mrf.mxu0 }
 0x106   :  { %v2195_v18 = vmul.f32 %v796_v31, %v796_v31 }
 0x107   :  { %v458_v27 = vpop.f32.mrf.mxu2  ;;  %v567_v14 = vpop.f32.mrf.mxu3 }
 0x108   :  { %v568_v16 = vadd.f32 %v567_v14, %v454_v12  ;;  %884 = vrot.lane.b32.xlu1 %v2195_v18, %s1601_s8  ;;  %v459_v10 = vadd.f32 %v458_v27, %v348_v38 }
 0x10a   :  { %v707_v33 = vadd.f32 %v706_v28, %v568_v16 }
 0x10b   :  { %v803_v1 = vpop.f32.mrf.mxu1 }
 0x10c   :  { %v800_v59 = vadd.f32 %v799_v53, %v707_v33 }
 0x10d   :  { %v714_v19 = vpop.f32.mrf.mxu0 }
 0x10e   :  { %v2201_v11 = vmul.f32 %v800_v59, %v800_v59 }
 0x10f   :  { %v463_v9 = vpop.f32.mrf.mxu2  ;;  %v573_v37 = vpop.f32.mrf.mxu3 }
 0x110   :  { %v574_v2 = vadd.f32 %v573_v37, %v459_v10  ;;  %886 = vrot.lane.b32.xlu2 %v2201_v11, %s1601_s8  ;;  %v464_v23 = vadd.f32 %v463_v9, %v352_v36 }
 0x112   :  { %v711_v35 = vadd.f32 %v710_v63, %v574_v2 }
 0x113   :  { %v807_v47 = vpop.f32.mrf.mxu1 }
 0x114   :  { %v804_v45 = vadd.f32 %v803_v1, %v711_v35 }
 0x115   :  { %v718_v17 = vpop.f32.mrf.mxu0 }
 0x116   :  { %v2207_v46 = vmul.f32 %v804_v45, %v804_v45 }
 0x117   :  { %v468_v4 = vpop.f32.mrf.mxu2  ;;  %v579_v20 = vpop.f32.mrf.mxu3 }
 0x118   :  { %v580_v54 = vadd.f32 %v579_v20, %v464_v23  ;;  %888 = vrot.lane.b32.xlu2 %v2207_v46, %s1601_s8  ;;  %v469_v0 = vadd.f32 %v468_v4, %v356_v8 }
 0x11a   :  { %v715_v34 = vadd.f32 %v714_v19, %v580_v54 }
 0x11b   :  { %v811_v24 = vpop.f32.mrf.mxu1 }
 0x11c   :  { %v808_v30 = vadd.f32 %v807_v47, %v715_v34 }
 0x11d   :  { %v722_v15 = vpop.f32.mrf.mxu0 }
 0x11e   :  { %v2213_v26 = vmul.f32 %v808_v30, %v808_v30 }
 0x11f   :  { %v473_v43 = vpop.f32.mrf.mxu2  ;;  %v585_v6 = vpop.f32.mrf.mxu3 }
 0x120   :  { %v586_v41 = vadd.f32 %v585_v6, %v469_v0  ;;  %890 = vrot.lane.b32.xlu0 %v2213_v26, %s1601_s8  ;;  %v474_v58 = vadd.f32 %v473_v43, %v2097_v3 }
 0x122   :  { %v719_v42 = vadd.f32 %v718_v17, %v586_v41 }
 0x123   :  { %v815_v60 = vpop.f32.mrf.mxu1 }
 0x124   :  { %v812_v44 = vadd.f32 %v811_v24, %v719_v42 }
 0x125   :  { %v726_v40 = vpop.f32.mrf.mxu0 }
 0x126   :  { %v2218_v55 = vmul.f32 %v812_v44, %v812_v44 }
 0x127   :  { %v478_v57 = vpop.f32.mrf.mxu2  ;;  %v591_v5 = vpop.f32.mrf.mxu3 }
 0x128   :  { %v592_v28 = vadd.f32 %v591_v5, %v474_v58  ;;  %892 = vrot.lane.b32.xlu1 %v2218_v55, %s1601_s8  ;;  %v479_v7 = vadd.f32 %v478_v57, %v2108_v50 }
 0x12a   :  { %v723_v52 = vadd.f32 %v722_v15, %v592_v28 }
 0x12b   :  { %v819_v22 = vpop.f32.mrf.mxu1 }
 0x12c   :  { %v816_v29 = vadd.f32 %v815_v60, %v723_v52 }
 0x12d   :  { %v730_v62 = vpop.f32.mrf.mxu0 }
 0x12e   :  { %v2223_v53 = vmul.f32 %v816_v29, %v816_v29 }
 0x12f   :  { %v483_v13 = vpop.f32.mrf.mxu2  ;;  %v597_v31 = vpop.f32.mrf.mxu3 }
 0x130   :  { %v598_v63 = vadd.f32 %v597_v31, %v479_v7  ;;  %894 = vrot.lane.b32.xlu2 %v2223_v53, %s1601_s8  ;;  %v484_v14 = vadd.f32 %v483_v13, %v2119_v61 }
 0x132   :  { %v727_v3 = vadd.f32 %v726_v40, %v598_v63 }
 0x133   :  { %v823_v12 = vpop.f32.mrf.mxu1 }
 0x134   :  { %v820_v27 = vadd.f32 %v819_v22, %v727_v3 }
 0x135   :  { %v734_v33 = vpop.f32.mrf.mxu0 }
 0x136   :  { %v2228_v16 = vmul.f32 %v820_v27, %v820_v27 }
 0x137   :  { %v488_v1 = vpop.f32.mrf.mxu2  ;;  %v603_v38 = vpop.f32.mrf.mxu3 }
 0x138   :  { %v604_v59 = vadd.f32 %v603_v38, %v484_v14  ;;  %896 = vrot.lane.b32.xlu0 %v2228_v16, %s1601_s8  ;;  %v489_v9 = vadd.f32 %v488_v1, %v2130_v56 }
 0x13a   :  { %v731_v50 = vadd.f32 %v730_v62, %v604_v59 }
 0x13b   :  { %v827_v19 = vpop.f32.mrf.mxu1 }
 0x13c   :  { %v824_v10 = vadd.f32 %v823_v12, %v731_v50 }
 0x13d   :  { %v738_v61 = vpop.f32.mrf.mxu0 }
 0x13e   :  { %v2233_v37 = vmul.f32 %v824_v10, %v824_v10 }
 0x13f   :  { %v493_v2 = vpop.f32.mrf.mxu2  ;;  %v609_v35 = vpop.f32.mrf.mxu3 }
 0x140   :  { %v610_v47 = vadd.f32 %v609_v35, %v489_v9  ;;  %898 = vrot.lane.b32.xlu1 %v2233_v37, %s1601_s8  ;;  %v494_v23 = vadd.f32 %v493_v2, %v2141_v39 }
 0x142   :  { %v735_v36 = vadd.f32 %v734_v33, %v610_v47 }
 0x143   :  { %v831_v45 = vpop.f32.mrf.mxu1 }
 0x144   :  { %v828_v17 = vadd.f32 %v827_v19, %v735_v36 }
 0x145   :  { %v742_v24 = vpop.f32.mrf.mxu0 }
 0x146   :  { %v2238_v4 = vmul.f32 %v828_v17, %v828_v17 }
 0x147   :  { %v498_v20 = vpop.f32.mrf.mxu2  ;;  %v615_v54 = vpop.f32.mrf.mxu3 }
 0x148   :  { %v616_v34 = vadd.f32 %v615_v54, %v494_v23  ;;  %900 = vrot.lane.b32.xlu2 %v2238_v4, %s1601_s8  ;;  %v499_v15 = vadd.f32 %v498_v20, %v2152_v21 }
 0x14a   :  { %v739_v56 = vadd.f32 %v738_v61, %v616_v34 }
 0x14b   :  { %v835_v30 = vpop.f32.mrf.mxu1 }
 0x14c   :  { %v832_v8 = vadd.f32 %v831_v45, %v739_v56 }
 0x14d   :  { %v746_v60 = vpop.f32.mrf.mxu0 }
 0x14e   :  { %v2243_v0 = vmul.f32 %v832_v8, %v832_v8 }
 0x14f   :  { %v621_v43 = vpop.f32.mrf.mxu3  ;;  %v503_v39 = vpop.f32.mrf.mxu2 }
 0x150   :  { %v622_v6 = vadd.f32 %v621_v43, %v499_v15  ;;  %902 = vrot.lane.b32.xlu0 %v2243_v0, %s1601_s8  ;;  %v504_v44 = vadd.f32 %v503_v39, %v2163_v25 }
 0x152   :  { %v743_v41 = vadd.f32 %v742_v24, %v622_v6 }
 0x153   :  { %v839_v57 = vpop.f32.mrf.mxu1 }
 0x154   :  { %v836_v42 = vadd.f32 %v835_v30, %v743_v41 }
 0x155   :  { %v750_v7 = vpop.f32.mrf.mxu0 }
 0x156   :  { %v2248_v40 = vmul.f32 %v836_v42, %v836_v42 }
 0x157   :  { %v627_v58 = vpop.f32.mrf.mxu3  ;;  %v508_v28 = vpop.f32.mrf.mxu2 }
 0x158   :  { %v628_v5 = vadd.f32 %v627_v58, %v504_v44  ;;  %904 = vrot.lane.b32.xlu1 %v2248_v40, %s1601_s8  ;;  %v509_v22 = vadd.f32 %v508_v28, %v2171_v51 }
 0x15a   :  { %v747_v21 = vadd.f32 %v746_v60, %v628_v5 }
 0x15b   :  { %v843_v25 = vpop.f32.mrf.mxu1 }
 0x15c   :  { %v840_v52 = vadd.f32 %v839_v57, %v747_v21 }
 0x15e   :  { %v2253_v29 = vmul.f32 %v840_v52, %v840_v52 }
 0x15f   :  { %v633_v62 = vpop.f32.mrf.mxu3 }
 0x160   :  { %v634_v13 = vadd.f32 %v633_v62, %v509_v22  ;;  %906 = vrot.lane.b32.xlu2 %v2253_v29, %s1601_s8 }
 0x162   :  { %v751_v31 = vadd.f32 %v750_v7, %v634_v13  ;;  %v879_v63 = vpop.permute.xlu0 %878 }
 0x163   :  { %v926_v3 = vadd.f32 %v879_v63, %v2177_v49 }
 0x164   :  { %v844_v12 = vadd.f32 %v843_v25, %v751_v31 }
 0x165   :  { %1521 = vrsqrt.f32 %v926_v3  ;;  %vm949_vm2 = vcmp.eq.f32.partialorder %v926_v3, inf  ;;  %v952_v15 = vand.u32 2147483648, %v926_v3  ;;  %vm951_vm3 = vcmp.eq.f32.partialorder %v926_v3, 0.0 }
 0x166   :  { %v2258_v27 = vmul.f32 %v844_v12, %v844_v12 }
 0x168   :  { %908 = vrot.lane.b32.xlu0 %v2258_v27, %s1601_s8 }
 0x16a   :  { %v887_v51 = vpop.permute.xlu2 %886  ;;  %v881_v14 = vpop.permute.xlu0 %880 }
 0x16b   :  { %v1522_v33 = vpop.eup %1521  ;;  %v2263_v1 = vadd.f32 %v887_v51, %v2201_v11  ;;  %v927_v38 = vadd.f32 %v881_v14, %v2183_v32 }
 0x16c   :  { %v943_v59 = vmul.f32 %v1522_v33, %v926_v3 }
 0x16d   :  { %1523 = vrsqrt.f32 %v2263_v1  ;;  %vm961_vm5 = vcmp.eq.f32.partialorder %v927_v38, inf  ;;  %vm997_vm6 = vcmp.eq.f32.partialorder %v2263_v1, inf  ;;  %v964_v52 = vand.u32 2147483648, %v927_v38 }
 0x16e   :  { %1525 = vrsqrt.f32 %v927_v38  ;;  %v944_v49 = vmul.f32 %v1522_v33, %v943_v59  ;;  %vm963_vm7 = vcmp.eq.f32.partialorder %v927_v38, 0.0  ;;  %v1000_v7 = vand.u32 2147483648, %v2263_v1 }
 0x16f   :  { %vm999_vm8 = vcmp.eq.f32.partialorder %v2263_v1, 0.0 }
 0x170   :  { %v945_v50 = vmul.f32 0.5, %v944_v49 }
 0x172   :  { %v889_v19 = vpop.permute.xlu2 %888  ;;  %v883_v10 = vpop.permute.xlu1 %882  ;;  %v946_v9 = vsub.f32 1.5, %v945_v50 }
 0x173   :  { %v1524_v2 = vpop.eup %1523  ;;  %v2268_v35 = vadd.f32 %v889_v19, %v2207_v46  ;;  %v2271_v47 = vadd.f32 %v883_v10, %v2189_v48 }
 0x174   :  { %v1526_v11 = vpop.eup %1525  ;;  %v947_v61 = vmul.f32 %v1522_v33, %v946_v9  ;;  %v991_v32 = vmul.f32 %v1524_v2, %v2263_v1 }
 0x175   :  { %1527 = vrsqrt.f32 %v2268_v35  ;;  %v955_v36 = vmul.f32 %v1526_v11, %v927_v38  ;;  %vm973_vm9 = vcmp.eq.f32.partialorder %v2271_v47, inf  ;;  %v976_v10 = vand.u32 2147483648, %v2271_v47 }
 0x176   :  { %1529 = vrsqrt.f32 %v2271_v47  ;;  %v992_v45 = vmul.f32 %v1524_v2, %v991_v32  ;;  %v948_v17 = vmul.f32 %v947_v61, %v926_v3  ;;  %vm975_vm10 = vcmp.eq.f32.partialorder %v2271_v47, 0.0 }
 0x177   :  { %v956_v23 = vmul.f32 %v1526_v11, %v955_v36  ;;  %vm1009_vm13 = vcmp.eq.f32.partialorder %v2268_v35, inf  ;;  %vm1011_vm14 = vcmp.eq.f32.partialorder %v2268_v35, 0.0 }
 0x178   :  { %v993_v20 = vmul.f32 0.5, %v992_v45  ;;  %v950_v24 = vsel %vm949_vm2, %v926_v3, %v948_v17 }
 0x179   :  { %v957_v54 = vmul.f32 0.5, %v956_v23  ;;  %v953_v42 = vsel %vm951_vm3, %v952_v15, %v950_v24 }
 0x17a   :  { %v885_v34 = vpop.permute.xlu1 %884  ;;  %v994_v46 = vsub.f32 1.5, %v993_v20  ;;  %v1135_v57 = vsel %vm1134_vm4, %v953_v42, 0.0 }
 0x17b   :  { %v1528_v56 = vpop.eup %1527  ;;  %v2277_v48 = vadd.f32 %v885_v34, %v2195_v18  ;;  %v958_v8 = vsub.f32 1.5, %v957_v54 }
 0x17c   :  { %v1530_v30 = vpop.eup %1529  ;;  %v995_v43 = vmul.f32 %v1524_v2, %v994_v46  ;;  %v1003_v6 = vmul.f32 %v1528_v56, %v2268_v35 }
 0x17d   :  { %1531 = vrsqrt.f32 %v2277_v48  ;;  %v959_v39 = vmul.f32 %v1526_v11, %v958_v8  ;;  %v967_v41 = vmul.f32 %v1530_v30, %v2271_v47  ;;  %vm985_vm11 = vcmp.eq.f32.partialorder %v2277_v48, inf }
 0x17e   :  { %v996_v44 = vmul.f32 %v995_v43, %v2263_v1  ;;  %v1004_v58 = vmul.f32 %v1528_v56, %v1003_v6  ;;  %v988_v32 = vand.u32 2147483648, %v2277_v48  ;;  %vm987_vm12 = vcmp.eq.f32.partialorder %v2277_v48, 0.0 }
 0x17f   :  { %v960_v60 = vmul.f32 %v959_v39, %v927_v38  ;;  %v968_v18 = vmul.f32 %v1530_v30, %v967_v41 }
 0x180   :  { %v998_v22 = vsel %vm997_vm6, %v2263_v1, %v996_v44  ;;  %v1005_v25 = vmul.f32 0.5, %v1004_v58 }
 0x181   :  { %v969_v5 = vmul.f32 0.5, %v968_v18  ;;  %v962_v21 = vsel %vm961_vm5, %v927_v38, %v960_v60  ;;  %v1001_v3 = vsel %vm999_vm8, %v1000_v7, %v998_v22 }
 0x182   :  { %1136 = vadd.xlane.f32.xlu1 %v1135_v57  ;;  %v965_v31 = vsel %vm963_vm7, %v964_v52, %v962_v21  ;;  %v1006_v59 = vsub.f32 1.5, %v1005_v25  ;;  %v1147_v38 = vsel %vm1134_vm4, %v1001_v3, 0.0 }
 0x183   :  { %v1532_v28 = vpop.eup %1531  ;;  %v970_v62 = vsub.f32 1.5, %v969_v5  ;;  %v1138_v14 = vsel %vm1134_vm4, %v965_v31, 0.0 }
 0x184   :  { %v979_v13 = vmul.f32 %v1532_v28, %v2277_v48  ;;  %v1007_v2 = vmul.f32 %v1528_v56, %v1006_v59  ;;  %v1012_v56 = vand.u32 2147483648, %v2268_v35 }
 0x185   :  { %v971_v63 = vmul.f32 %v1530_v30, %v970_v62 }
 0x186   :  { %v980_v12 = vmul.f32 %v1532_v28, %v979_v13 }
 0x187   :  { %v972_v51 = vmul.f32 %v971_v63, %v2271_v47 }
 0x188   :  { %v981_v33 = vmul.f32 0.5, %v980_v12 }
 0x189   :  { %1139 = vadd.xlane.f32.xlu2 %v1138_v14  ;;  %v974_v1 = vsel %vm973_vm9, %v2271_v47, %v972_v51 }
 0x18a   :  { %v895_v49 = vpop.permute.xlu2 %894  ;;  %1148 = vadd.xlane.f32.xlu1 %v1147_v38  ;;  %v982_v50 = vsub.f32 1.5, %v981_v33  ;;  %v977_v11 = vsel %vm975_vm10, %v976_v10, %v974_v1 }
 0x18b   :  { %v934_v19 = vadd.f32 %v895_v49, %v2223_v53  ;;  %v1008_v53 = vmul.f32 %v1007_v2, %v2268_v35  ;;  %v1141_v45 = vsel %vm1134_vm4, %v977_v11, 0.0 }
 0x18c   :  { %v983_v9 = vmul.f32 %v1532_v28, %v982_v50 }
 0x18d   :  { %1533 = vrsqrt.f32 %v934_v19  ;;  %v1010_v34 = vsel %vm1009_vm13, %v2268_v35, %v1008_v53  ;;  %vm1045_vm15 = vcmp.eq.f32.partialorder %v934_v19, inf  ;;  %v1048_v44 = vand.u32 2147483648, %v934_v19 }
 0x18e   :  { %v984_v61 = vmul.f32 %v983_v9, %v2277_v48  ;;  %v1013_v24 = vsel %vm1011_vm14, %v1012_v56, %v1010_v34  ;;  %vm1047_vm0 = vcmp.eq.f32.partialorder %v934_v19, 0.0 }
 0x18f   :  { %v1150_v15 = vsel %vm1134_vm4, %v1013_v24, 0.0 }
 0x190   :  { %v986_v36 = vsel %vm985_vm11, %v2277_v48, %v984_v61 }
 0x191   :  { %v989_v17 = vsel %vm987_vm12, %v988_v32, %v986_v36 }
 0x192   :  { %1142 = vadd.xlane.f32.xlu0 %v1141_v45  ;;  %v891_v23 = vpop.permute.xlu0 %890  ;;  %v1144_v47 = vsel %vm1134_vm4, %v989_v17, 0.0 }
 0x193   :  { %v1534_v20 = vpop.eup %1533  ;;  %v932_v54 = vadd.f32 %v891_v23, %v2213_v26  ;;  %1145 = vadd.xlane.f32.xlu2 %v1144_v47 }
 0x194   :  { %v1039_v46 = vmul.f32 %v1534_v20, %v934_v19 }
 0x195   :  { %1535 = vrsqrt.f32 %v932_v54  ;;  %vm1021_vm2 = vcmp.eq.f32.partialorder %v932_v54, inf  ;;  %v1024_v13 = vand.u32 2147483648, %v932_v54  ;;  %vm1023_vm3 = vcmp.eq.f32.partialorder %v932_v54, 0.0 }
 0x196   :  { %v1040_v48 = vmul.f32 %v1534_v20, %v1039_v46 }
 0x198   :  { %v1041_v8 = vmul.f32 0.5, %v1040_v48 }
 0x19a   :  { %v893_v30 = vpop.permute.xlu1 %892  ;;  %v1042_v43 = vsub.f32 1.5, %v1041_v8 }
 0x19b   :  { %v1536_v6 = vpop.eup %1535  ;;  %v933_v26 = vadd.f32 %v893_v30, %v2218_v55  ;;  %1151 = vadd.xlane.f32.xlu2 %v1150_v15 }
 0x19c   :  { %v1043_v39 = vmul.f32 %v1534_v20, %v1042_v43  ;;  %v1015_v41 = vmul.f32 %v1536_v6, %v932_v54 }
 0x19d   :  { %1537 = vrsqrt.f32 %v933_v26  ;;  %vm1033_vm5 = vcmp.eq.f32.partialorder %v933_v26, inf  ;;  %v1036_v50 = vand.u32 2147483648, %v933_v26  ;;  %vm1035_vm6 = vcmp.eq.f32.partialorder %v933_v26, 0.0 }
 0x19e   :  { %v1044_v42 = vmul.f32 %v1043_v39, %v934_v19  ;;  %v1016_v60 = vmul.f32 %v1536_v6, %v1015_v41 }
 0x1a0   :  { %v1046_v18 = vsel %vm1045_vm15, %v934_v19, %v1044_v42  ;;  %v1017_v35 = vmul.f32 0.5, %v1016_v60 }
 0x1a1   :  { %v1049_v58 = vsel %vm1047_vm0, %v1048_v44, %v1046_v18 }
 0x1a2   :  { %v901_v57 = vpop.permute.xlu2 %900  ;;  %v1159_v5 = vsel %vm1134_vm4, %v1049_v58, 0.0  ;;  %v1018_v21 = vsub.f32 1.5, %v1017_v35 }
 0x1a3   :  { %v1538_v28 = vpop.eup %1537  ;;  %v937_v52 = vadd.f32 %v901_v57, %v2238_v4  ;;  %1160 = vadd.xlane.f32.xlu2 %v1159_v5 }
 0x1a4   :  { %v1019_v55 = vmul.f32 %v1536_v6, %v1018_v21  ;;  %v1027_v22 = vmul.f32 %v1538_v28, %v933_v26 }
 0x1a5   :  { %1539 = vrsqrt.f32 %v937_v52  ;;  %vm1081_vm7 = vcmp.eq.f32.partialorder %v937_v52, inf  ;;  %v1084_v17 = vand.u32 2147483648, %v937_v52  ;;  %vm1083_vm8 = vcmp.eq.f32.partialorder %v937_v52, 0.0 }
 0x1a6   :  { %v1020_v62 = vmul.f32 %v1019_v55, %v932_v54  ;;  %v1028_v7 = vmul.f32 %v1538_v28, %v1027_v22 }
 0x1a8   :  { %v1022_v25 = vsel %vm1021_vm2, %v932_v54, %v1020_v62  ;;  %v1029_v31 = vmul.f32 0.5, %v1028_v7 }
 0x1a9   :  { %v1025_v63 = vsel %vm1023_vm3, %v1024_v13, %v1022_v25 }
 0x1aa   :  { %v897_v3 = vpop.permute.xlu0 %896  ;;  %v1153_v12 = vsel %vm1134_vm4, %v1025_v63, 0.0  ;;  %v1030_v51 = vsub.f32 1.5, %v1029_v31 }
 0x1ab   :  { %v1540_v14 = vpop.eup %1539  ;;  %v935_v33 = vadd.f32 %v897_v3, %v2228_v16  ;;  %1154 = vadd.xlane.f32.xlu0 %v1153_v12 }
 0x1ac   :  { %v1031_v4 = vmul.f32 %v1538_v28, %v1030_v51  ;;  %v1075_v59 = vmul.f32 %v1540_v14, %v937_v52 }
 0x1ad   :  { %1541 = vrsqrt.f32 %v935_v33  ;;  %vm1057_vm9 = vcmp.eq.f32.partialorder %v935_v33, inf  ;;  %v1060_v15 = vand.u32 2147483648, %v935_v33  ;;  %vm1059_vm10 = vcmp.eq.f32.partialorder %v935_v33, 0.0 }
 0x1ae   :  { %v1032_v38 = vmul.f32 %v1031_v4, %v933_v26  ;;  %v1076_v49 = vmul.f32 %v1540_v14, %v1075_v59 }
 0x1b0   :  { %v1034_v19 = vsel %vm1033_vm5, %v933_v26, %v1032_v38  ;;  %v1077_v1 = vmul.f32 0.5, %v1076_v49 }
 0x1b1   :  { %v1037_v10 = vsel %vm1035_vm6, %v1036_v50, %v1034_v19 }
 0x1b2   :  { %v899_v9 = vpop.permute.xlu1 %898  ;;  %v1156_v2 = vsel %vm1134_vm4, %v1037_v10, 0.0  ;;  %v1078_v11 = vsub.f32 1.5, %v1077_v1 }
 0x1b3   :  { %v1542_v61 = vpop.eup %1541  ;;  %v936_v32 = vadd.f32 %v899_v9, %v2233_v37  ;;  %1157 = vadd.xlane.f32.xlu1 %v1156_v2 }
 0x1b4   :  { %v1079_v16 = vmul.f32 %v1540_v14, %v1078_v11  ;;  %v1051_v36 = vmul.f32 %v1542_v61, %v935_v33 }
 0x1b5   :  { %1543 = vrsqrt.f32 %v936_v32  ;;  %vm1069_vm11 = vcmp.eq.f32.partialorder %v936_v32, inf  ;;  %v1072_v57 = vand.u32 2147483648, %v936_v32  ;;  %vm1071_vm12 = vcmp.eq.f32.partialorder %v936_v32, 0.0 }
 0x1b6   :  { %v1080_v53 = vmul.f32 %v1079_v16, %v937_v52  ;;  %v1052_v45 = vmul.f32 %v1542_v61, %v1051_v36 }
 0x1b8   :  { %v1082_v23 = vsel %vm1081_vm7, %v937_v52, %v1080_v53  ;;  %v1053_v47 = vmul.f32 0.5, %v1052_v45 }
 0x1b9   :  { %v1085_v20 = vsel %vm1083_vm8, %v1084_v17, %v1082_v23 }
 0x1ba   :  { %v907_v54 = vpop.permute.xlu2 %906  ;;  %v1168_v34 = vsel %vm1134_vm4, %v1085_v20, 0.0  ;;  %v1054_v46 = vsub.f32 1.5, %v1053_v47 }
 0x1bb   :  { %v1544_v56 = vpop.eup %1543  ;;  %v940_v48 = vadd.f32 %v907_v54, %v2253_v29  ;;  %1169 = vadd.xlane.f32.xlu2 %v1168_v34 }
 0x1bc   :  { %v1055_v37 = vmul.f32 %v1542_v61, %v1054_v46  ;;  %v1063_v24 = vmul.f32 %v1544_v56, %v936_v32 }
 0x1bd   :  { %1545 = vrsqrt.f32 %v940_v48  ;;  %vm1117_vm13 = vcmp.eq.f32.partialorder %v940_v48, inf  ;;  %v1120_v63 = vand.u32 2147483648, %v940_v48  ;;  %vm1119_vm14 = vcmp.eq.f32.partialorder %v940_v48, 0.0 }
 0x1be   :  { %v1056_v8 = vmul.f32 %v1055_v37, %v935_v33  ;;  %v1064_v30 = vmul.f32 %v1544_v56, %v1063_v24 }
 0x1c0   :  { %v1058_v43 = vsel %vm1057_vm9, %v935_v33, %v1056_v8  ;;  %v1065_v6 = vmul.f32 0.5, %v1064_v30 }
 0x1c1   :  { %v1061_v26 = vsel %vm1059_vm10, %v1060_v15, %v1058_v43 }
 0x1c2   :  { %v903_v39 = vpop.permute.xlu0 %902  ;;  %v1162_v41 = vsel %vm1134_vm4, %v1061_v26, 0.0  ;;  %v1066_v42 = vsub.f32 1.5, %v1065_v6 }
 0x1c3   :  { %v1546_v60 = vpop.eup %1545  ;;  %v938_v44 = vadd.f32 %v903_v39, %v2243_v0  ;;  %1163 = vadd.xlane.f32.xlu0 %v1162_v41 }
 0x1c4   :  { %v1067_v29 = vmul.f32 %v1544_v56, %v1066_v42  ;;  %v1111_v18 = vmul.f32 %v1546_v60, %v940_v48 }
 0x1c5   :  { %1547 = vrsqrt.f32 %v938_v44  ;;  %vm1093_vm15 = vcmp.eq.f32.partialorder %v938_v44, inf  ;;  %v1096_v50 = vand.u32 2147483648, %v938_v44  ;;  %vm1095_vm0 = vcmp.eq.f32.partialorder %v938_v44, 0.0 }
 0x1c6   :  { %v1068_v35 = vmul.f32 %v1067_v29, %v936_v32  ;;  %v1112_v58 = vmul.f32 %v1546_v60, %v1111_v18 }
 0x1c8   :  { %v1070_v5 = vsel %vm1069_vm11, %v936_v32, %v1068_v35  ;;  %v1113_v21 = vmul.f32 0.5, %v1112_v58 }
 0x1c9   :  { %v1073_v28 = vsel %vm1071_vm12, %v1072_v57, %v1070_v5 }
 0x1ca   :  { %v905_v52 = vpop.permute.xlu1 %904  ;;  %v1165_v55 = vsel %vm1134_vm4, %v1073_v28, 0.0  ;;  %v1114_v22 = vsub.f32 1.5, %v1113_v21 }
 0x1cb   :  { %v1548_v62 = vpop.eup %1547  ;;  %v939_v7 = vadd.f32 %v905_v52, %v2248_v40  ;;  %1166 = vadd.xlane.f32.xlu1 %v1165_v55 }
 0x1cc   :  { %v1115_v0 = vmul.f32 %v1546_v60, %v1114_v22  ;;  %v1087_v13 = vmul.f32 %v1548_v62, %v938_v44  ;;  %v1439_v60 = vlaneseq }
 0x1cd   :  { %1549 = vrsqrt.f32 %v939_v7  ;;  %vm1105_vm2 = vcmp.eq.f32.partialorder %v939_v7, inf  ;;  %v1108_v36 = vand.u32 2147483648, %v939_v7  ;;  %vm1107_vm3 = vcmp.eq.f32.partialorder %v939_v7, 0.0 }
 0x1ce   :  { %v1116_v25 = vmul.f32 %v1115_v0, %v940_v48  ;;  %v1088_v31 = vmul.f32 %v1548_v62, %v1087_v13  ;;  %v2329_v35 = vand.u32 127, %v1439_v60 }
 0x1d0   :  { %v1118_v3 = vsel %vm1117_vm13, %v940_v48, %v1116_v25  ;;  %v1089_v12 = vmul.f32 0.5, %v1088_v31  ;;  %vm1441_vm8 = vcmp.ge.s32.totalorder %v2329_v35, 36 }
 0x1d1   :  { %v1121_v51 = vsel %vm1119_vm14, %v1120_v63, %v1118_v3 }
 0x1d2   :  { %v1177_v14 = vsel %vm1134_vm4, %v1121_v51, 0.0  ;;  %v1090_v33 = vsub.f32 1.5, %v1089_v12 }
 0x1d3   :  { %v1550_v4 = vpop.eup %1549  ;;  %1178 = vadd.xlane.f32.xlu2 %v1177_v14 }
 0x1d4   :  { %v1091_v59 = vmul.f32 %v1548_v62, %v1090_v33  ;;  %v1099_v38 = vmul.f32 %v1550_v4, %v939_v7 }
 0x1d6   :  { %v1092_v40 = vmul.f32 %v1091_v59, %v938_v44  ;;  %v1100_v49 = vmul.f32 %v1550_v4, %v1099_v38 }
 0x1d8   :  { %v1094_v19 = vsel %vm1093_vm15, %v938_v44, %v1092_v40  ;;  %v1101_v1 = vmul.f32 0.5, %v1100_v49  ;;  %v1585_v40 = vld [vmem:[%s2498_s1] sm:$0xff] }
 0x1d9   :  { %v1097_v10 = vsel %vm1095_vm0, %v1096_v50, %v1094_v19 }
 0x1da   :  { %v909_v9 = vpop.permute.xlu0 %908  ;;  %v1171_v2 = vsel %vm1134_vm4, %v1097_v10, 0.0  ;;  %v1102_v11 = vsub.f32 1.5, %v1101_v1 }
 0x1db   :  { %v941_v61 = vadd.f32 %v909_v9, %v2258_v27  ;;  %1172 = vadd.xlane.f32.xlu0 %v1171_v2 }
 0x1dc   :  { %v1103_v32 = vmul.f32 %v1550_v4, %v1102_v11 }
 0x1dd   :  { %1551 = vrsqrt.f32 %v941_v61  ;;  %vm1129_vm5 = vcmp.eq.f32.partialorder %v941_v61, inf  ;;  %v1132_v27 = vand.u32 2147483648, %v941_v61  ;;  %vm1131_vm6 = vcmp.eq.f32.partialorder %v941_v61, 0.0 }
 0x1de   :  { %v1104_v16 = vmul.f32 %v1103_v32, %v939_v7 }
 0x1e0   :  { %v1106_v53 = vsel %vm1105_vm2, %v939_v7, %v1104_v16 }
 0x1e1   :  { %v1109_v45 = vsel %vm1107_vm3, %v1108_v36, %v1106_v53 }
 0x1e2   :  { %v1174_v17 = vsel %vm1134_vm4, %v1109_v45, 0.0 }
 0x1e3   :  { %v1552_v23 = vpop.eup %1551  ;;  %1175 = vadd.xlane.f32.xlu1 %v1174_v17 }
 0x1e4   :  { %v1123_v47 = vmul.f32 %v1552_v23, %v941_v61 }
 0x1e6   :  { %v1124_v20 = vmul.f32 %v1552_v23, %v1123_v47 }
 0x1e8   :  { %v1125_v54 = vmul.f32 0.5, %v1124_v20 }
 0x1ea   :  { %v1126_v34 = vsub.f32 1.5, %v1125_v54 }
 0x1ec   :  { %v1127_v46 = vmul.f32 %v1552_v23, %v1126_v34  ;;  %v1586_v34 = vld [vmem:[%s2498_s1 + $0x8] sm:$0xff] }
 0x1ee   :  { %v1128_v56 = vmul.f32 %v1127_v46, %v941_v61 }
 0x1f0   :  { %v1130_v48 = vsel %vm1129_vm5, %v941_v61, %v1128_v56 }
 0x1f1   :  { %v1133_v37 = vsel %vm1131_vm6, %v1132_v27, %v1130_v48 }
 0x1f2   :  { %v1180_v24 = vsel %vm1134_vm4, %v1133_v37, 0.0  ;;  %v1587_v37 = vld [vmem:[%s2498_s1 + $0x20] sm:$0xff] }
 0x1f3   :  { %1181 = vadd.xlane.f32.xlu0 %v1180_v24 }
 0x1f5   :  { %v1137_v8 = vpop.xlane.xlu1 %1136 }
 0x1f6   :  { %v1183_v30 = vmul.f32 0.33333334, %v1137_v8 }
 0x1f8   :  { %v1199_v15 = vmax.f32 %v1183_v30, 1e-06 }
 0x1fa   :  { %1553 = vrcp.f32 %v1199_v15  ;;  %v1226_v58 = vand.u32 2147483648, %v1199_v15  ;;  %v1224_v5 = vand.u32 2147483647, %v1199_v15  ;;  %vm1220_vm7 = vweird.f32 %v1199_v15 }
 0x1fc   :  { %v1140_v43 = vpop.xlane.xlu2 %1139  ;;  %v1227_v0 = vor.u32 1.1754944e-38, %v1226_v58  ;;  %vm1225_vm10 = vcmp.eq.f32.partialorder %v1224_v5, 8.507059e+37 }
 0x1fd   :  { %v1184_v6 = vmul.f32 0.33333334, %v1140_v43  ;;  %v1149_v26 = vpop.xlane.xlu1 %1148 }
 0x1fe   :  { %v1187_v39 = vmul.f32 0.33333334, %v1149_v26 }
 0x1ff   :  { %v1200_v41 = vmax.f32 %v1184_v6, 1e-06 }
 0x200   :  { %v1554_v42 = vpop.eup %1553  ;;  %v1203_v44 = vmax.f32 %v1187_v39, 1e-06 }
 0x201   :  { %v1216_v29 = vmul.f32 %v1554_v42, %v1199_v15  ;;  %1555 = vrcp.f32 %v1200_v41  ;;  %vm1221_vm4 = vweird.f32 %v1554_v42  ;;  %v1238_v14 = vand.u32 2147483647, %v1200_v41 }
 0x202   :  { %1557 = vrcp.f32 %v1203_v44  ;;  %vm1222_vm9 = vmor %vm1220_vm7, %vm1221_vm4  ;;  %v1240_v4 = vand.u32 2147483648, %v1200_v41  ;;  %v1282_v38 = vand.u32 2147483648, %v1203_v44  ;;  %v1280_v1 = vand.u32 2147483647, %v1203_v44 }
 0x203   :  { %v1217_v18 = vsub.f32 1.0, %v1216_v29  ;;  %vm1234_vm13 = vweird.f32 %v1200_v41  ;;  %vm1276_vm15 = vweird.f32 %v1203_v44  ;;  %vm1239_vm0 = vcmp.eq.f32.partialorder %v1238_v14, 8.507059e+37 }
 0x204   :  { %v1241_v2 = vor.u32 1.1754944e-38, %v1240_v4  ;;  %v1283_v36 = vor.u32 1.1754944e-38, %v1282_v38  ;;  %vm1281_vm3 = vcmp.eq.f32.partialorder %v1280_v1, 8.507059e+37 }
 0x205   :  { %v1218_v57 = vmul.f32 %v1554_v42, %v1217_v18  ;;  %v1143_v21 = vpop.xlane.xlu0 %1142 }
 0x206   :  { %v1185_v28 = vmul.f32 0.33333334, %v1143_v21  ;;  %v1146_v52 = vpop.xlane.xlu2 %1145 }
 0x207   :  { %v1556_v55 = vpop.eup %1555  ;;  %v1219_v22 = vadd.f32 %v1554_v42, %v1218_v57  ;;  %v1186_v62 = vmul.f32 0.33333334, %v1146_v52 }
 0x208   :  { %v1558_v7 = vpop.eup %1557  ;;  %v1230_v13 = vmul.f32 %v1556_v55, %v1200_v41  ;;  %v2332_v25 = vmax.f32 %v1185_v28, 1e-06  ;;  %vm1235_vm11 = vweird.f32 %v1556_v55 }
 0x209   :  { %v1223_v31 = vsel %vm1222_vm9, %v1554_v42, %v1219_v22  ;;  %v1272_v63 = vmul.f32 %v1558_v7, %v1203_v44  ;;  %v2334_v3 = vmax.f32 %v1186_v62, 1e-06  ;;  %vm1277_vm12 = vweird.f32 %v1558_v7  ;;  %vm1236_vm14 = vmor %vm1234_vm13, %vm1235_vm11  ;;  %v1588_v22 = vld [vmem:[%s2498_s1 + $0x10] sm:$0xff] }
 0x20a   :  { %v1228_v12 = vsel %vm1225_vm10, %v1227_v0, %v1223_v31  ;;  %v1231_v51 = vsub.f32 1.0, %v1230_v13  ;;  %1559 = vrcp.f32 %v2332_v25  ;;  %vm1278_vm2 = vmor %vm1276_vm15, %vm1277_vm12  ;;  %v1254_v8 = vand.u32 2147483648, %v2332_v25 }
 0x20b   :  { %v1444_v33 = vsel %vm1441_vm8, %v1228_v12, 1.0  ;;  %v1273_v59 = vsub.f32 1.0, %v1272_v63  ;;  %1561 = vrcp.f32 %v2334_v3  ;;  %v1252_v15 = vand.u32 2147483647, %v2332_v25 }
 0x20c   :  { %v1460_v49 = vmul.f32 %v1585_v40, %v1444_v33  ;;  %v1232_v50 = vmul.f32 %v1556_v55, %v1231_v51  ;;  %vm1248_vm6 = vweird.f32 %v2332_v25  ;;  %v1268_v6 = vand.u32 2147483648, %v2334_v3 }
 0x20d   :  { %v1274_v19 = vmul.f32 %v1558_v7, %v1273_v59  ;;  %v1266_v42 = vand.u32 2147483647, %v2334_v3  ;;  %v1255_v60 = vor.u32 1.1754944e-38, %v1254_v8  ;;  %vm1253_vm9 = vcmp.eq.f32.partialorder %v1252_v15, 8.507059e+37 }
 0x20e   :  { %1476 = vst.msk [vmem:[%s2499_s2] sm:$0xff] %vm39_vm1, %v1460_v49  ;;  %v1233_v10 = vadd.f32 %v1556_v55, %v1232_v50  ;;  %v1152_v9 = vpop.xlane.xlu2 %1151  ;;  %vm1262_vm10 = vweird.f32 %v2334_v3  ;;  %v1269_v5 = vor.u32 1.1754944e-38, %v1268_v6 }
 0x20f   :  { %v1275_v11 = vadd.f32 %v1558_v7, %v1274_v19  ;;  %v1188_v61 = vmul.f32 0.33333334, %v1152_v9  ;;  %vm1267_vm12 = vcmp.eq.f32.partialorder %v1266_v42, 8.507059e+37 }
 0x210   :  { %v1560_v32 = vpop.eup %1559  ;;  %v1237_v16 = vsel %vm1236_vm14, %v1556_v55, %v1233_v10  ;;  %v1590_v10 = vld [vmem:[%s2498_s1 + $0x28] sm:$0xff] }
 0x211   :  { %v1242_v53 = vsel %vm1239_vm0, %v1241_v2, %v1237_v16  ;;  %v1279_v45 = vsel %vm1278_vm2, %v1558_v7, %v1275_v11  ;;  %v1244_v17 = vmul.f32 %v1560_v32, %v2332_v25  ;;  %v1562_v23 = vpop.eup %1561  ;;  %v2350_v54 = vmax.f32 %v1188_v61, 1e-06  ;;  %v1589_v25 = vld [vmem:[%s2498_s1 + $0x18] sm:$0xff] }
 0x212   :  { %v1445_v47 = vsel %vm1441_vm8, %v1242_v53, 1.0  ;;  %v1284_v20 = vsel %vm1281_vm3, %v1283_v36, %v1279_v45  ;;  %v1258_v48 = vmul.f32 %v1562_v23, %v2334_v3  ;;  %vm1249_vm5 = vweird.f32 %v1560_v32 }
 0x213   :  { %v1461_v46 = vmul.f32 %v1586_v34, %v1445_v47  ;;  %v1448_v56 = vsel %vm1441_vm8, %v1284_v20, 1.0  ;;  %v1245_v27 = vsub.f32 1.0, %v1244_v17  ;;  %1563 = vrcp.f32 %v2350_v54  ;;  %vm1250_vm7 = vmor %vm1248_vm6, %vm1249_vm5 }
 0x214   :  { %v1464_v24 = vmul.f32 %v1587_v37, %v1448_v56  ;;  %v1259_v43 = vsub.f32 1.0, %v1258_v48  ;;  %vm1263_vm4 = vweird.f32 %v1562_v23  ;;  %v1296_v63 = vand.u32 2147483648, %v2350_v54  ;;  %v1591_v56 = vld [vmem:[%s2498_s1 + $0x40] sm:$0xff] }
 0x215   :  { %1477 = vst.msk [vmem:[%s2499_s2 + $0x8] sm:$0xff] %vm39_vm1, %v1461_v46  ;;  %v1246_v30 = vmul.f32 %v1560_v32, %v1245_v27  ;;  %vm1264_vm11 = vmor %vm1262_vm10, %vm1263_vm4  ;;  %v1294_v51 = vand.u32 2147483647, %v2350_v54  ;;  %vm1290_vm14 = vweird.f32 %v2350_v54 }
 0x216   :  { %1480 = vst.msk [vmem:[%s2499_s2 + $0x20] sm:$0xff] %vm39_vm1, %v1464_v24  ;;  %v1161_v26 = vpop.xlane.xlu2 %1160  ;;  %v1260_v41 = vmul.f32 %v1562_v23, %v1259_v43  ;;  %v1297_v38 = vor.u32 1.1754944e-38, %v1296_v63 }
 0x217   :  { %v1247_v39 = vadd.f32 %v1560_v32, %v1246_v30  ;;  %v1191_v44 = vmul.f32 0.33333334, %v1161_v26  ;;  %vm1295_vm0 = vcmp.eq.f32.partialorder %v1294_v51, 8.507059e+37 }
 0x218   :  { %v1261_v18 = vadd.f32 %v1562_v23, %v1260_v41 }
 0x219   :  { %v1251_v29 = vsel %vm1250_vm7, %v1560_v32, %v1247_v39  ;;  %v1564_v58 = vpop.eup %1563  ;;  %v1207_v21 = vmax.f32 %v1191_v44, 1e-06  ;;  %v1592_v44 = vld [vmem:[%s2498_s1 + $0x30] sm:$0xff] }
 0x21a   :  { %v1256_v57 = vsel %vm1253_vm9, %v1255_v60, %v1251_v29  ;;  %v1265_v52 = vsel %vm1264_vm11, %v1562_v23, %v1261_v18  ;;  %v1286_v55 = vmul.f32 %v1564_v58, %v2350_v54  ;;  %vm1291_vm13 = vweird.f32 %v1564_v58 }
 0x21b   :  { %v1446_v28 = vsel %vm1441_vm8, %v1256_v57, 1.0  ;;  %v1270_v7 = vsel %vm1267_vm12, %v1269_v5, %v1265_v52  ;;  %1565 = vrcp.f32 %v1207_v21  ;;  %vm1292_vm15 = vmor %vm1290_vm14, %vm1291_vm13  ;;  %v1338_v2 = vand.u32 2147483648, %v1207_v21 }
 0x21c   :  { %v1462_v62 = vmul.f32 %v1588_v22, %v1446_v28  ;;  %v1447_v0 = vsel %vm1441_vm8, %v1270_v7, 1.0  ;;  %v1287_v13 = vsub.f32 1.0, %v1286_v55  ;;  %v1336_v32 = vand.u32 2147483647, %v1207_v21 }
 0x21d   :  { %v1463_v31 = vmul.f32 %v1589_v25, %v1447_v0  ;;  %vm1332_vm3 = vweird.f32 %v1207_v21  ;;  %v1339_v17 = vor.u32 1.1754944e-38, %v1338_v2 }
 0x21e   :  { %1478 = vst.msk [vmem:[%s2499_s2 + $0x10] sm:$0xff] %vm39_vm1, %v1462_v62  ;;  %v1155_v3 = vpop.xlane.xlu0 %1154  ;;  %v1288_v12 = vmul.f32 %v1564_v58, %v1287_v13  ;;  %vm1337_vm6 = vcmp.eq.f32.partialorder %v1336_v32, 8.507059e+37 }
 0x21f   :  { %v1189_v14 = vmul.f32 0.33333334, %v1155_v3  ;;  %1479 = vst.msk [vmem:[%s2499_s2 + $0x18] sm:$0xff] %vm39_vm1, %v1463_v31  ;;  %v1593_v31 = vld [vmem:[%s2498_s1 + $0x38] sm:$0xff] }
 0x220   :  { %v1289_v33 = vadd.f32 %v1564_v58, %v1288_v12 }
 0x221   :  { %v1205_v4 = vmax.f32 %v1189_v14, 1e-06  ;;  %v1566_v59 = vpop.eup %1565 }
 0x222   :  { %v1293_v40 = vsel %vm1292_vm15, %v1564_v58, %v1289_v33  ;;  %v1328_v49 = vmul.f32 %v1566_v59, %v1207_v21  ;;  %vm1333_vm2 = vweird.f32 %v1566_v59 }
 0x223   :  { %1567 = vrcp.f32 %v1205_v4  ;;  %v1298_v50 = vsel %vm1295_vm0, %v1297_v38, %v1293_v40  ;;  %vm1334_vm5 = vmor %vm1332_vm3, %vm1333_vm2  ;;  %v1310_v46 = vand.u32 2147483648, %v1205_v4  ;;  %v1308_v37 = vand.u32 2147483647, %v1205_v4 }
 0x224   :  { %v1449_v19 = vsel %vm1441_vm8, %v1298_v50, 1.0  ;;  %v1329_v1 = vsub.f32 1.0, %v1328_v49  ;;  %vm1304_vm7 = vweird.f32 %v1205_v4 }
 0x225   :  { %v1465_v9 = vmul.f32 %v1590_v10, %v1449_v19  ;;  %v1311_v43 = vor.u32 1.1754944e-38, %v1310_v46  ;;  %vm1309_vm10 = vcmp.eq.f32.partialorder %v1308_v37, 8.507059e+37 }
 0x226   :  { %v1158_v11 = vpop.xlane.xlu1 %1157  ;;  %v1330_v61 = vmul.f32 %v1566_v59, %v1329_v1 }
 0x227   :  { %v1190_v16 = vmul.f32 0.33333334, %v1158_v11  ;;  %1481 = vst.msk [vmem:[%s2499_s2 + $0x28] sm:$0xff] %vm39_vm1, %v1465_v9  ;;  %v1594_v9 = vld [vmem:[%s2498_s1 + $0x58] sm:$0xff] }
 0x228   :  { %v1331_v53 = vadd.f32 %v1566_v59, %v1330_v61 }
 0x229   :  { %v1568_v36 = vpop.eup %1567  ;;  %v1206_v45 = vmax.f32 %v1190_v16, 1e-06 }
 0x22a   :  { %v1300_v23 = vmul.f32 %v1568_v36, %v1205_v4  ;;  %v1335_v47 = vsel %vm1334_vm5, %v1566_v59, %v1331_v53  ;;  %vm1305_vm4 = vweird.f32 %v1568_v36 }
 0x22b   :  { %1569 = vrcp.f32 %v1206_v45  ;;  %v1340_v20 = vsel %vm1337_vm6, %v1339_v17, %v1335_v47  ;;  %vm1306_vm9 = vmor %vm1304_vm7, %vm1305_vm4  ;;  %v1324_v18 = vand.u32 2147483648, %v1206_v45  ;;  %v1322_v57 = vand.u32 2147483647, %v1206_v45 }
 0x22c   :  { %v1301_v54 = vsub.f32 1.0, %v1300_v23  ;;  %v1452_v34 = vsel %vm1441_vm8, %v1340_v20, 1.0  ;;  %vm1318_vm12 = vweird.f32 %v1206_v45 }
 0x22d   :  { %v1468_v27 = vmul.f32 %v1591_v56, %v1452_v34  ;;  %v1325_v55 = vor.u32 1.1754944e-38, %v1324_v18  ;;  %vm1323_vm14 = vcmp.eq.f32.partialorder %v1322_v57, 8.507059e+37  ;;  %v1595_v56 = vld [vmem:[%s2498_s1 + $0x48] sm:$0xff] }
 0x22e   :  { %v1302_v48 = vmul.f32 %v1568_v36, %v1301_v54  ;;  %v1170_v24 = vpop.xlane.xlu2 %1169 }
 0x22f   :  { %v1194_v8 = vmul.f32 0.33333334, %v1170_v24  ;;  %1484 = vst.msk [vmem:[%s2499_s2 + $0x40] sm:$0xff] %vm39_vm1, %v1468_v27 }
 0x230   :  { %v1303_v30 = vadd.f32 %v1568_v36, %v1302_v48 }
 0x231   :  { %v1570_v15 = vpop.eup %1569  ;;  %v1210_v6 = vmax.f32 %v1194_v8, 1e-06 }
 0x232   :  { %v1307_v26 = vsel %vm1306_vm9, %v1568_v36, %v1303_v30  ;;  %v1314_v39 = vmul.f32 %v1570_v15, %v1206_v45  ;;  %vm1319_vm11 = vweird.f32 %v1570_v15 }
 0x233   :  { %v1312_v41 = vsel %vm1309_vm10, %v1311_v43, %v1307_v26  ;;  %1571 = vrcp.f32 %v1210_v6  ;;  %vm1320_vm13 = vmor %vm1318_vm12, %vm1319_vm11  ;;  %v1380_v3 = vand.u32 2147483648, %v1210_v6  ;;  %v1378_v51 = vand.u32 2147483647, %v1210_v6 }
 0x234   :  { %v1450_v42 = vsel %vm1441_vm8, %v1312_v41, 1.0  ;;  %v1315_v60 = vsub.f32 1.0, %v1314_v39  ;;  %vm1374_vm0 = vweird.f32 %v1210_v6 }
 0x235   :  { %v1466_v29 = vmul.f32 %v1592_v44, %v1450_v42  ;;  %v1381_v38 = vor.u32 1.1754944e-38, %v1380_v3  ;;  %vm1379_vm3 = vcmp.eq.f32.partialorder %v1378_v51, 8.507059e+37 }
 0x236   :  { %v1316_v58 = vmul.f32 %v1570_v15, %v1315_v60  ;;  %v1164_v5 = vpop.xlane.xlu0 %1163 }
 0x237   :  { %1482 = vst.msk [vmem:[%s2499_s2 + $0x30] sm:$0xff] %vm39_vm1, %v1466_v29  ;;  %v1192_v21 = vmul.f32 0.33333334, %v1164_v5  ;;  %v1596_v29 = vld [vmem:[%s2498_s1 + $0x50] sm:$0xff] }
 0x238   :  { %v1317_v28 = vadd.f32 %v1570_v15, %v1316_v58 }
 0x239   :  { %v1572_v52 = vpop.eup %1571  ;;  %v1208_v22 = vmax.f32 %v1192_v21, 1e-06 }
 0x23a   :  { %v1321_v62 = vsel %vm1320_vm13, %v1570_v15, %v1317_v28  ;;  %v1370_v7 = vmul.f32 %v1572_v52, %v1210_v6  ;;  %vm1375_vm15 = vweird.f32 %v1572_v52 }
 0x23b   :  { %v1326_v0 = vsel %vm1323_vm14, %v1325_v55, %v1321_v62  ;;  %1573 = vrcp.f32 %v1208_v22  ;;  %vm1376_vm2 = vmor %vm1374_vm0, %vm1375_vm15  ;;  %v1352_v11 = vand.u32 2147483648, %v1208_v22  ;;  %v1350_v32 = vand.u32 2147483647, %v1208_v22 }
 0x23c   :  { %v1451_v13 = vsel %vm1441_vm8, %v1326_v0, 1.0  ;;  %v1371_v25 = vsub.f32 1.0, %v1370_v7  ;;  %vm1346_vm6 = vweird.f32 %v1208_v22 }
 0x23d   :  { %v1467_v63 = vmul.f32 %v1593_v31, %v1451_v13  ;;  %v1353_v17 = vor.u32 1.1754944e-38, %v1352_v11  ;;  %vm1351_vm7 = vcmp.eq.f32.partialorder %v1350_v32, 8.507059e+37 }
 0x23e   :  { %v1372_v12 = vmul.f32 %v1572_v52, %v1371_v25  ;;  %v1167_v14 = vpop.xlane.xlu1 %1166 }
 0x23f   :  { %1483 = vst.msk [vmem:[%s2499_s2 + $0x38] sm:$0xff] %vm39_vm1, %v1467_v63  ;;  %v1193_v33 = vmul.f32 0.33333334, %v1167_v14  ;;  %v1597_v63 = vld [vmem:[%s2498_s1 + $0x70] sm:$0xff] }
 0x240   :  { %v1373_v4 = vadd.f32 %v1572_v52, %v1372_v12 }
 0x241   :  { %v1574_v59 = vpop.eup %1573  ;;  %v1209_v40 = vmax.f32 %v1193_v33, 1e-06 }
 0x242   :  { %v1377_v49 = vsel %vm1376_vm2, %v1572_v52, %v1373_v4  ;;  %v1342_v50 = vmul.f32 %v1574_v59, %v1208_v22  ;;  %vm1347_vm5 = vweird.f32 %v1574_v59 }
 0x243   :  { %v1382_v19 = vsel %vm1379_vm3, %v1381_v38, %v1377_v49  ;;  %1575 = vrcp.f32 %v1209_v40  ;;  %vm1348_vm4 = vmor %vm1346_vm6, %vm1347_vm5  ;;  %v1366_v48 = vand.u32 2147483648, %v1209_v40  ;;  %v1364_v24 = vand.u32 2147483647, %v1209_v40 }
 0x244   :  { %v1455_v1 = vsel %vm1441_vm8, %v1382_v19, 1.0  ;;  %v1343_v10 = vsub.f32 1.0, %v1342_v50  ;;  %vm1360_vm10 = vweird.f32 %v1209_v40 }
 0x245   :  { %v1471_v2 = vmul.f32 %v1594_v9, %v1455_v1  ;;  %v1367_v6 = vor.u32 1.1754944e-38, %v1366_v48  ;;  %vm1365_vm12 = vcmp.eq.f32.partialorder %v1364_v24, 8.507059e+37  ;;  %v1598_v1 = vld [vmem:[%s2498_s1 + $0x60] sm:$0xff] }
 0x246   :  { %v1344_v61 = vmul.f32 %v1574_v59, %v1343_v10  ;;  %v1179_v16 = vpop.xlane.xlu2 %1178 }
 0x247   :  { %1487 = vst.msk [vmem:[%s2499_s2 + $0x58] sm:$0xff] %vm39_vm1, %v1471_v2  ;;  %v1197_v36 = vmul.f32 0.33333334, %v1179_v16 }
 0x248   :  { %v1345_v53 = vadd.f32 %v1574_v59, %v1344_v61 }
 0x249   :  { %v1576_v45 = vpop.eup %1575  ;;  %v1213_v23 = vmax.f32 %v1197_v36, 1e-06 }
 0x24a   :  { %v1349_v47 = vsel %vm1348_vm4, %v1574_v59, %v1345_v53  ;;  %v1356_v20 = vmul.f32 %v1576_v45, %v1209_v40  ;;  %vm1361_vm9 = vweird.f32 %v1576_v45 }
 0x24b   :  { %v1354_v54 = vsel %vm1351_vm7, %v1353_v17, %v1349_v47  ;;  %1577 = vrcp.f32 %v1213_v23  ;;  %vm1362_vm11 = vmor %vm1360_vm10, %vm1361_vm9  ;;  %v1422_v58 = vand.u32 2147483648, %v1213_v23  ;;  %v1420_v5 = vand.u32 2147483647, %v1213_v23  ;;  %v1599_v47 = vld [vmem:[%s2498_s1 + $0x68] sm:$0xff] }
 0x24c   :  { %v1453_v34 = vsel %vm1441_vm8, %v1354_v54, 1.0  ;;  %v1357_v46 = vsub.f32 1.0, %v1356_v20  ;;  %vm1416_vm14 = vweird.f32 %v1213_v23 }
 0x24d   :  { %v1469_v27 = vmul.f32 %v1595_v56, %v1453_v34  ;;  %v1423_v22 = vor.u32 1.1754944e-38, %v1422_v58  ;;  %vm1421_vm0 = vcmp.eq.f32.partialorder %v1420_v5, 8.507059e+37 }
 0x24e   :  { %v1358_v37 = vmul.f32 %v1576_v45, %v1357_v46  ;;  %v1173_v8 = vpop.xlane.xlu0 %1172 }
 0x24f   :  { %1485 = vst.msk [vmem:[%s2499_s2 + $0x48] sm:$0xff] %vm39_vm1, %v1469_v27  ;;  %v1195_v30 = vmul.f32 0.33333334, %v1173_v8 }
 0x250   :  { %v1359_v15 = vadd.f32 %v1576_v45, %v1358_v37 }
 0x251   :  { %v1578_v43 = vpop.eup %1577  ;;  %v1211_v26 = vmax.f32 %v1195_v30, 1e-06 }
 0x252   :  { %v1363_v39 = vsel %vm1362_vm11, %v1576_v45, %v1359_v15  ;;  %v1412_v41 = vmul.f32 %v1578_v43, %v1213_v23  ;;  %vm1417_vm13 = vweird.f32 %v1578_v43 }
 0x253   :  { %v1368_v42 = vsel %vm1365_vm12, %v1367_v6, %v1363_v39  ;;  %1579 = vrcp.f32 %v1211_v26  ;;  %vm1418_vm15 = vmor %vm1416_vm14, %vm1417_vm13  ;;  %v1394_v12 = vand.u32 2147483648, %v1211_v26  ;;  %v1392_v14 = vand.u32 2147483647, %v1211_v26 }
 0x254   :  { %v1454_v60 = vsel %vm1441_vm8, %v1368_v42, 1.0  ;;  %v1413_v44 = vsub.f32 1.0, %v1412_v41  ;;  %vm1388_vm3 = vweird.f32 %v1211_v26 }
 0x255   :  { %v1470_v18 = vmul.f32 %v1596_v29, %v1454_v60  ;;  %v1395_v59 = vor.u32 1.1754944e-38, %v1394_v12  ;;  %vm1393_vm6 = vcmp.eq.f32.partialorder %v1392_v14, 8.507059e+37 }
 0x256   :  { %v1414_v57 = vmul.f32 %v1578_v43, %v1413_v44  ;;  %v1176_v21 = vpop.xlane.xlu1 %1175 }
 0x257   :  { %1486 = vst.msk [vmem:[%s2499_s2 + $0x50] sm:$0xff] %vm39_vm1, %v1470_v18  ;;  %v1196_v28 = vmul.f32 0.33333334, %v1176_v21 }
 0x258   :  { %v1415_v52 = vadd.f32 %v1578_v43, %v1414_v57 }
 0x259   :  { %v1580_v55 = vpop.eup %1579  ;;  %v1212_v62 = vmax.f32 %v1196_v28, 1e-06 }
 0x25a   :  { %v1419_v7 = vsel %vm1418_vm15, %v1578_v43, %v1415_v52  ;;  %v1384_v0 = vmul.f32 %v1580_v55, %v1211_v26  ;;  %vm1389_vm2 = vweird.f32 %v1580_v55  ;;  %v1600_v43 = vld [vmem:[%s2498_s1 + $0x78] sm:$0xff] }
 0x25b   :  { %v1424_v13 = vsel %vm1421_vm0, %v1423_v22, %v1419_v7  ;;  %1581 = vrcp.f32 %v1212_v62  ;;  %vm1390_vm5 = vmor %vm1388_vm3, %vm1389_vm2  ;;  %v1408_v9 = vand.u32 2147483648, %v1212_v62  ;;  %v1406_v11 = vand.u32 2147483647, %v1212_v62 }
 0x25c   :  { %v1458_v25 = vsel %vm1441_vm8, %v1424_v13, 1.0  ;;  %v1385_v31 = vsub.f32 1.0, %v1384_v0  ;;  %vm1402_vm7 = vweird.f32 %v1212_v62 }
 0x25d   :  { %v1474_v3 = vmul.f32 %v1597_v63, %v1458_v25  ;;  %v1409_v36 = vor.u32 1.1754944e-38, %v1408_v9  ;;  %vm1407_vm10 = vcmp.eq.f32.partialorder %v1406_v11, 8.507059e+37 }
 0x25e   :  { %v1386_v51 = vmul.f32 %v1580_v55, %v1385_v31 }
 0x25f   :  { %1490 = vst.msk [vmem:[%s2499_s2 + $0x70] sm:$0xff] %vm39_vm1, %v1474_v3 }
 0x260   :  { %v1387_v33 = vadd.f32 %v1580_v55, %v1386_v51 }
 0x261   :  { %v1582_v4 = vpop.eup %1581 }
 0x262   :  { %v1391_v38 = vsel %vm1390_vm5, %v1580_v55, %v1387_v33  ;;  %v1398_v40 = vmul.f32 %v1582_v4, %v1212_v62  ;;  %vm1403_vm4 = vweird.f32 %v1582_v4 }
 0x263   :  { %v1396_v49 = vsel %vm1393_vm6, %v1395_v59, %v1391_v38  ;;  %vm1404_vm9 = vmor %vm1402_vm7, %vm1403_vm4 }
 0x264   :  { %v1456_v50 = vsel %vm1441_vm8, %v1396_v49, 1.0  ;;  %v1399_v19 = vsub.f32 1.0, %v1398_v40 }
 0x265   :  { %v1472_v10 = vmul.f32 %v1598_v1, %v1456_v50 }
 0x266   :  { %v1400_v2 = vmul.f32 %v1582_v4, %v1399_v19  ;;  %v1182_v61 = vpop.xlane.xlu0 %1181 }
 0x267   :  { %1488 = vst.msk [vmem:[%s2499_s2 + $0x60] sm:$0xff] %vm39_vm1, %v1472_v10  ;;  %v1198_v32 = vmul.f32 0.33333334, %v1182_v61 }
 0x268   :  { %v1401_v16 = vadd.f32 %v1582_v4, %v1400_v2 }
 0x269   :  { %v1214_v53 = vmax.f32 %v1198_v32, 1e-06 }
 0x26a   :  { %v1405_v45 = vsel %vm1404_vm9, %v1582_v4, %v1401_v16 }
 0x26b   :  { %v1410_v17 = vsel %vm1407_vm10, %v1409_v36, %v1405_v45  ;;  %1583 = vrcp.f32 %v1214_v53  ;;  %v1436_v56 = vand.u32 2147483648, %v1214_v53  ;;  %v1434_v48 = vand.u32 2147483647, %v1214_v53 }
 0x26c   :  { %v1457_v23 = vsel %vm1441_vm8, %v1410_v17, 1.0  ;;  %vm1430_vm12 = vweird.f32 %v1214_v53 }
 0x26d   :  { %v1473_v20 = vmul.f32 %v1599_v47, %v1457_v23  ;;  %v1437_v24 = vor.u32 1.1754944e-38, %v1436_v56  ;;  %vm1435_vm14 = vcmp.eq.f32.partialorder %v1434_v48, 8.507059e+37 }
 0x26f   :  { %1489 = vst.msk [vmem:[%s2499_s2 + $0x68] sm:$0xff] %vm39_vm1, %v1473_v20 }
 0x271   :  { %v1584_v54 = vpop.eup %1583 }
 0x272   :  { %v1426_v34 = vmul.f32 %v1584_v54, %v1214_v53  ;;  %vm1431_vm11 = vweird.f32 %v1584_v54 }
 0x273   :  { %vm1432_vm13 = vmor %vm1430_vm12, %vm1431_vm11 }
 0x274   :  { %v1427_v46 = vsub.f32 1.0, %v1426_v34 }
 0x276   :  { %v1428_v27 = vmul.f32 %v1584_v54, %v1427_v46 }
 0x278   :  { %v1429_v37 = vadd.f32 %v1584_v54, %v1428_v27 }
 0x27a   :  { %v1433_v8 = vsel %vm1432_vm13, %v1584_v54, %v1429_v37 }
 0x27b   :  { %v1438_v30 = vsel %vm1435_vm14, %v1437_v24, %v1433_v8 }
 0x27c   :  { %v1459_v15 = vsel %vm1441_vm8, %v1438_v30, 1.0 }
 0x27d   :  { %v1475_v6 = vmul.f32 %v1600_v43, %v1459_v15 }
 0x27f   :  { %1491 = vst.msk [vmem:[%s2499_s2 + $0x78] sm:$0xff] %vm39_vm1, %v1475_v6 }

</bundles_post_ra>
